<compile_context>
chip_gen: v5e
topology: v5e:2x2
jax: 0.10.0
libtpu: 0.0.40
codegen_flags: <defaults>
</compile_context>

<pallas_src>
import functools
import math

import jax
import jax.numpy as jnp
from jax import lax
from jax.experimental import pallas as pl
from jax.experimental.pallas import tpu as pltpu


# ----------------------------- kernel -----------------------------------

def _layernorm(x, gamma, beta, eps=1e-5):
    mu = jnp.mean(x, axis=-1, keepdims=True)
    var = jnp.mean((x - mu) ** 2, axis=-1, keepdims=True)   # biased var (torch LN)
    return (x - mu) * lax.rsqrt(var + eps) * gamma + beta


def _gelu_exact(x):
    # torch nn.GELU default (exact erf form), fp32
    return 0.5 * x * (1.0 + lax.erf(x * (1.0 / math.sqrt(2.0))))


def _block_kernel(x_ref, g1_ref, b1_ref,
                  wqkv_ref, wp_ref, bp_ref,
                  g2_ref, b2_ref, w1_ref, bh_ref, w2_ref, bo_ref,
                  o_ref, cat_ref, *, num_heads, scale, block_b):
    C = x_ref.shape[-1]
    hd = C // num_heads

    # Grid-invariant bf16 weight tiles (read once per grid step).
    wqkv = wqkv_ref[...]        # (C, 3C)  bf16   [Q | K | V], head-major inside each
    wp = wp_ref[...]            # (C, C)   bf16
    w1 = w1_ref[...]            # (C, H)   bf16
    w2 = w2_ref[...]            # (H, C)   bf16

    for bi in range(block_b):                                # static, small
        x = x_ref[bi]                                        # (N, C) fp32

        # ---- LayerNorm1 + fused QKV (single wide MXU matmul) ----
        xn = _layernorm(x, g1_ref[0], b1_ref[0])
        qkv = jnp.dot(xn.astype(jnp.bfloat16), wqkv,
                      preferred_element_type=jnp.float32)    # (N, 3C) fp32
        qkv = qkv.astype(jnp.bfloat16)

        # ---- per-head attention; context written into (N,C) scratch ----
        for h in range(num_heads):                           # static lane slices
            qh = qkv[:, h * hd:(h + 1) * hd]                 # (N, hd) bf16
            kh = qkv[:, C + h * hd:C + (h + 1) * hd]
            vh = qkv[:, 2 * C + h * hd:2 * C + (h + 1) * hd]
            s = lax.dot_general(qh, kh, (((1,), (1,)), ((), ())),
                                preferred_element_type=jnp.float32) * scale
            s = s - jnp.max(s, axis=-1, keepdims=True)       # fp32 softmax
            p = jnp.exp(s)
            p = p * pl.reciprocal(jnp.sum(p, axis=-1, keepdims=True),
                                  approx=True)
            oh = jnp.dot(p.astype(jnp.bfloat16), vh,
                         preferred_element_type=jnp.float32) # (N, hd)
            cat_ref[:, h * hd:(h + 1) * hd] = oh             # concat into (N, C)

        # ---- fused output projection + residual ----
        attn_proj = jnp.dot(cat_ref[...].astype(jnp.bfloat16), wp,
                            preferred_element_type=jnp.float32)
        x1 = x + attn_proj + bp_ref[0]

        # ---- LayerNorm2 + MLP (fc1 -> GELU -> fc2) + residual ----
        x2n = _layernorm(x1, g2_ref[0], b2_ref[0])
        h1 = jnp.dot(x2n.astype(jnp.bfloat16), w1,
                     preferred_element_type=jnp.float32) + bh_ref[0]
        h1 = _gelu_exact(h1)
        mlp_out = jnp.dot(h1.astype(jnp.bfloat16), w2,
                          preferred_element_type=jnp.float32) + bo_ref[0]

        o_ref[bi] = (x1 + mlp_out).astype(o_ref.dtype)


# ----------------------------- wrapper -----------------------------------

def block_forward(x, params, num_heads, block_b=1):
    B, N, C = x.shape
    assert B % block_b == 0, "block_b must divide batch"
    hd = C // num_heads
    scale = hd ** (-0.5)
    hidden = params["w1t"].shape[1]

    def full(shape):
        return pl.BlockSpec(shape, lambda b: (0,) * len(shape))

    kernel = functools.partial(_block_kernel, num_heads=num_heads,
                               scale=scale, block_b=block_b)

    operands = (x, params["g1"], params["b1"],
                params["wqkv"], params["wp"], params["bp"],
                params["g2"], params["b2"],
                params["w1t"], params["bh"], params["w2t"], params["bo"])

    # explicit scoped-VMEM budget: weights + double-buffered x/out tiles + scratch
    def nbytes(a):
        return int(a.size) * a.dtype.itemsize

    blk_bytes = block_b * N * C * 4
    needed = (2 * sum(nbytes(a) for a in operands[1:])    # weights (dbl-buffered)
              + 4 * blk_bytes                             # x + out, dbl-buffered
              + N * C * 4                                 # concat scratch
              + (4 << 20))                                # compiler headroom
    vmem_limit = int(min(96 << 20, max(24 << 20, needed)))

    return pl.pallas_call(
        kernel,
        out_shape=jax.ShapeDtypeStruct((B, N, C), x.dtype),
        grid_spec=pltpu.PrefetchScalarGridSpec(
            num_scalar_prefetch=0,
            grid=(B // block_b,),
            in_specs=[
                pl.BlockSpec((block_b, N, C), lambda b: (b, 0, 0)),  # x tile
                full((1, C)), full((1, C)),                 # LN1 gamma / beta
                full((C, 3 * C)),                           # fused QKV weight (bf16)
                full((C, C)),                               # proj weight (bf16)
                full((1, C)),                               # proj bias
                full((1, C)), full((1, C)),                 # LN2 gamma / beta
                full((C, hidden)), full((1, hidden)),       # fc1 W^T (bf16), b
                full((hidden, C)), full((1, C)),            # fc2 W^T (bf16), b
            ],
            out_specs=pl.BlockSpec((block_b, N, C), lambda b: (b, 0, 0)),
            scratch_shapes=[pltpu.VMEM((N, C), jnp.float32)],  # per-head concat
        ),
        compiler_params=pltpu.CompilerParams(
            dimension_semantics=("parallel",),
            vmem_limit_bytes=vmem_limit,
        ),
    )(*operands)


# --------------------- parameter construction ----------------------------

def make_params(key, dim, num_heads, mlp_ratio=4.0):
    hidden = int(dim * mlp_ratio)
    ks = jax.random.split(key, 8)
    qkv_w = 0.02 * jax.random.normal(ks[0], (3 * dim, dim), jnp.float32)   # torch (3C, C)
    proj_w = 0.02 * jax.random.normal(ks[1], (dim, dim), jnp.float32)      # torch (C, C)
    proj_b = 0.02 * jax.random.normal(ks[2], (dim,), jnp.float32)
    fc1_w = 0.02 * jax.random.normal(ks[3], (hidden, dim), jnp.float32)    # torch (H, C)
    fc1_b = 0.02 * jax.random.normal(ks[4], (hidden,), jnp.float32)
    fc2_w = 0.02 * jax.random.normal(ks[5], (dim, hidden), jnp.float32)    # torch (C, H)
    fc2_b = 0.02 * jax.random.normal(ks[6], (dim,), jnp.float32)
    g1 = jnp.ones((dim,), jnp.float32); b1 = jnp.zeros((dim,), jnp.float32)
    g2 = jnp.ones((dim,), jnp.float32); b2 = jnp.zeros((dim,), jnp.float32)

    params = dict(
        g1=g1[None, :], b1=b1[None, :],
        # pre-transposed, bf16 MXU-side weights
        wqkv=qkv_w.T.astype(jnp.bfloat16),      # (C, 3C): [Q|K|V], head-major within
        wp=proj_w.T.astype(jnp.bfloat16),       # (C, C)
        bp=proj_b[None, :],
        g2=g2[None, :], b2=b2[None, :],
        w1t=fc1_w.T.astype(jnp.bfloat16),       # (C, H)
        bh=fc1_b[None, :],
        w2t=fc2_w.T.astype(jnp.bfloat16),       # (H, C)
        bo=fc2_b[None, :],
        # fp32 originals kept for the pure-JAX reference check
        qkv_w=qkv_w, proj_w=proj_w, fc1_w=fc1_w, fc2_w=fc2_w,
    )
    return params


# --------------------- pure-JAX reference (for checking) -----------------

def block_ref(x, p, num_heads):
    B, N, C = x.shape
    hd = C // num_heads
    scale = hd ** (-0.5)

    def ln(v, g, b):
        mu = v.mean(-1, keepdims=True)
        var = ((v - mu) ** 2).mean(-1, keepdims=True)
        return (v - mu) / jnp.sqrt(var + 1e-5) * g + b

    xn = ln(x, p["g1"][0], p["b1"][0])
    qkv = jnp.einsum('bnc,dc->bnd', xn, p["qkv_w"], precision='highest')
    qkv = qkv.reshape(B, N, 3, num_heads, hd).transpose(2, 0, 3, 1, 4)
    q, k, v = qkv[0], qkv[1], qkv[2]
    attn = jnp.einsum('bhnd,bhmd->bhnm', q, k, precision='highest') * scale
    attn = jax.nn.softmax(attn, axis=-1)
    o = jnp.einsum('bhnm,bhmd->bhnd', attn, v, precision='highest')
    o = o.transpose(0, 2, 1, 3).reshape(B, N, C)
    o = jnp.einsum('bnc,dc->bnd', o, p["proj_w"], precision='highest') + p["bp"][0]
    x1 = x + o
    x2n = ln(x1, p["g2"][0], p["b2"][0])
    h1 = jnp.einsum('bnc,hc->bnh', x2n, p["fc1_w"], precision='highest') + p["bh"][0]
    h1 = 0.5 * h1 * (1.0 + jax.scipy.special.erf(h1 / jnp.sqrt(2.0)))
    out = jnp.einsum('bnh,ch->bnc', h1, p["fc2_w"], precision='highest') + p["bo"][0]
    return x1 + out


# ------------------------------- main -------------------------------------

if __name__ == "__main__":
    B, N, C = 2, 8, 32            # batch, tokens, embed dim
    NUM_HEADS = 8                 # head_dim = 4
    key = jax.random.PRNGKey(0)
    kx, kp = jax.random.split(key)
    x = jax.random.normal(kx, (B, N, C), jnp.float32)
    params = make_params(kp, C, NUM_HEADS, mlp_ratio=4.0)

    out = block_forward(x, params, NUM_HEADS, block_b=1)
    out = jax.block_until_ready(out)

    ref = block_ref(x, params, NUM_HEADS)
    assert out.shape == (B, N, C)
    assert jnp.allclose(out, ref, rtol=2e-2, atol=2e-2), "mismatch vs reference"

    print("KERNEL_OK")
</pallas_src>

<mosaic_0001>
module attributes {stable_mosaic.version = 11 : i64} {
  func.func @_block_kernel(%arg0: i32, %arg1: memref<1x8x32xf32, #tpu.memory_space<vmem>>, %arg2: memref<1x32xf32, #tpu.memory_space<vmem>>, %arg3: memref<1x32xf32, #tpu.memory_space<vmem>>, %arg4: memref<32x96xbf16, #tpu.memory_space<vmem>>, %arg5: memref<32x32xbf16, #tpu.memory_space<vmem>>, %arg6: memref<1x32xf32, #tpu.memory_space<vmem>>, %arg7: memref<1x32xf32, #tpu.memory_space<vmem>>, %arg8: memref<1x32xf32, #tpu.memory_space<vmem>>, %arg9: memref<32x128xbf16, #tpu.memory_space<vmem>>, %arg10: memref<1x128xf32, #tpu.memory_space<vmem>>, %arg11: memref<128x32xbf16, #tpu.memory_space<vmem>>, %arg12: memref<1x32xf32, #tpu.memory_space<vmem>>, %arg13: memref<1x8x32xf32, #tpu.memory_space<vmem>>, %arg14: memref<8x32xf32, #tpu.memory_space<vmem>>) attributes {dimension_semantics = [#tpu.dimension_semantics<parallel>], iteration_bounds = array<i64: 2>, scalar_prefetch = 0 : i64, scratch_operands = 1 : i64, tpu.core_type = #tpu.core_type<tc>, window_params = [{transform_indices = @transform_0, window_bounds = array<i64: 1, 8, 32>}, {pipeline_mode = #tpu.pipeline_mode<synchronous>, transform_indices = @transform_1, window_bounds = array<i64: 1, 32>}, {pipeline_mode = #tpu.pipeline_mode<synchronous>, transform_indices = @transform_2, window_bounds = array<i64: 1, 32>}, {pipeline_mode = #tpu.pipeline_mode<synchronous>, transform_indices = @transform_3, window_bounds = array<i64: 32, 96>}, {pipeline_mode = #tpu.pipeline_mode<synchronous>, transform_indices = @transform_4, window_bounds = array<i64: 32, 32>}, {pipeline_mode = #tpu.pipeline_mode<synchronous>, transform_indices = @transform_5, window_bounds = array<i64: 1, 32>}, {pipeline_mode = #tpu.pipeline_mode<synchronous>, transform_indices = @transform_6, window_bounds = array<i64: 1, 32>}, {pipeline_mode = #tpu.pipeline_mode<synchronous>, transform_indices = @transform_7, window_bounds = array<i64: 1, 32>}, {pipeline_mode = #tpu.pipeline_mode<synchronous>, transform_indices = @transform_8, window_bounds = array<i64: 32, 128>}, {pipeline_mode = #tpu.pipeline_mode<synchronous>, transform_indices = @transform_9, window_bounds = array<i64: 1, 128>}, {pipeline_mode = #tpu.pipeline_mode<synchronous>, transform_indices = @transform_10, window_bounds = array<i64: 128, 32>}, {pipeline_mode = #tpu.pipeline_mode<synchronous>, transform_indices = @transform_11, window_bounds = array<i64: 1, 32>}, {transform_indices = @transform_12, window_bounds = array<i64: 1, 8, 32>}]} {
    %c0 = arith.constant 0 : index
    %c0_0 = arith.constant 0 : index
    %0 = vector.load %arg4[%c0, %c0_0] : memref<32x96xbf16, #tpu.memory_space<vmem>>, vector<32x96xbf16>
    %c0_1 = arith.constant 0 : index
    %c0_2 = arith.constant 0 : index
    %1 = vector.load %arg5[%c0_1, %c0_2] : memref<32x32xbf16, #tpu.memory_space<vmem>>, vector<32x32xbf16>
    %c0_3 = arith.constant 0 : index
    %c0_4 = arith.constant 0 : index
    %2 = vector.load %arg9[%c0_3, %c0_4] : memref<32x128xbf16, #tpu.memory_space<vmem>>, vector<32x128xbf16>
    %c0_5 = arith.constant 0 : index
    %c0_6 = arith.constant 0 : index
    %3 = vector.load %arg11[%c0_5, %c0_6] : memref<128x32xbf16, #tpu.memory_space<vmem>>, vector<128x32xbf16>
    %c0_7 = arith.constant 0 : index
    %c0_8 = arith.constant 0 : index
    %c0_9 = arith.constant 0 : index
    %4 = vector.load %arg1[%c0_7, %c0_8, %c0_9] : memref<1x8x32xf32, #tpu.memory_space<vmem>>, vector<1x8x32xf32>
    %5 = vector.shape_cast %4 : vector<1x8x32xf32> to vector<8x32xf32>
    %c0_10 = arith.constant 0 : index
    %c0_11 = arith.constant 0 : index
    %6 = vector.load %arg2[%c0_10, %c0_11] : memref<1x32xf32, #tpu.memory_space<vmem>>, vector<1x32xf32>
    %7 = vector.shape_cast %6 : vector<1x32xf32> to vector<32xf32>
    %c0_12 = arith.constant 0 : index
    %c0_13 = arith.constant 0 : index
    %8 = vector.load %arg3[%c0_12, %c0_13] : memref<1x32xf32, #tpu.memory_space<vmem>>, vector<1x32xf32>
    %9 = vector.shape_cast %8 : vector<1x32xf32> to vector<32xf32>
    %cst = arith.constant dense<0.000000e+00> : vector<8xf32>
    %10 = vector.multi_reduction <add>, %5, %cst [1] : vector<8x32xf32> to vector<8xf32>
    %11 = vector.shape_cast %10 : vector<8xf32> to vector<8x1xf32>
    %cst_14 = arith.constant 3.200000e+01 : f32
    %12 = vector.broadcast %cst_14 : f32 to vector<8x1xf32>
    %13 = arith.divf %11, %12 : vector<8x1xf32>
    %14 = vector.broadcast %13 : vector<8x1xf32> to vector<8x32xf32>
    %15 = arith.subf %5, %14 : vector<8x32xf32>
    %16 = arith.mulf %15, %15 : vector<8x32xf32>
    %cst_15 = arith.constant dense<0.000000e+00> : vector<8xf32>
    %17 = vector.multi_reduction <add>, %16, %cst_15 [1] : vector<8x32xf32> to vector<8xf32>
    %18 = vector.shape_cast %17 : vector<8xf32> to vector<8x1xf32>
    %cst_16 = arith.constant 3.200000e+01 : f32
    %19 = vector.broadcast %cst_16 : f32 to vector<8x1xf32>
    %20 = arith.divf %18, %19 : vector<8x1xf32>
    %21 = vector.broadcast %13 : vector<8x1xf32> to vector<8x32xf32>
    %22 = arith.subf %5, %21 : vector<8x32xf32>
    %cst_17 = arith.constant 9.99999974E-6 : f32
    %23 = vector.broadcast %cst_17 : f32 to vector<8x1xf32>
    %24 = arith.addf %20, %23 : vector<8x1xf32>
    %25 = math.rsqrt %24 : vector<8x1xf32>
    %26 = vector.broadcast %25 : vector<8x1xf32> to vector<8x32xf32>
    %27 = arith.mulf %22, %26 : vector<8x32xf32>
    %28 = vector.shape_cast %7 : vector<32xf32> to vector<1x32xf32>
    %29 = vector.broadcast %28 : vector<1x32xf32> to vector<8x32xf32>
    %30 = arith.mulf %27, %29 : vector<8x32xf32>
    %31 = vector.shape_cast %9 : vector<32xf32> to vector<1x32xf32>
    %32 = vector.broadcast %31 : vector<1x32xf32> to vector<8x32xf32>
    %33 = arith.addf %30, %32 : vector<8x32xf32>
    %34 = arith.truncf %33 : vector<8x32xf32> to vector<8x32xbf16>
    %cst_18 = arith.constant dense<0.000000e+00> : vector<8x96xf32>
    %35 = tpu.matmul %34, %0, %cst_18 {dimension_numbers = #tpu.dot_dimension_numbers<[1], [0], [0], [1], [0, 0, 1, 1], [], []>} : vector<8x32xbf16>, vector<32x96xbf16>, vector<8x96xf32> -> vector<8x96xf32>
    %36 = arith.truncf %35 : vector<8x96xf32> to vector<8x96xbf16>
    %37 = vector.extract_strided_slice %36 {offsets = [0, 0], sizes = [8, 4], strides = [1, 1]} : vector<8x96xbf16> to vector<8x4xbf16>
    %38 = vector.extract_strided_slice %36 {offsets = [0, 32], sizes = [8, 4], strides = [1, 1]} : vector<8x96xbf16> to vector<8x4xbf16>
    %39 = vector.extract_strided_slice %36 {offsets = [0, 64], sizes = [8, 4], strides = [1, 1]} : vector<8x96xbf16> to vector<8x4xbf16>
    %cst_19 = arith.constant dense<0.000000e+00> : vector<8x8xf32>
    %40 = tpu.matmul %37, %38, %cst_19 {dimension_numbers = #tpu.dot_dimension_numbers<[1], [1], [0], [0], [0, 0, 1, 0], [], []>} : vector<8x4xbf16>, vector<8x4xbf16>, vector<8x8xf32> -> vector<8x8xf32>
    %cst_20 = arith.constant 5.000000e-01 : f32
    %41 = vector.broadcast %cst_20 : f32 to vector<8x8xf32>
    %42 = arith.mulf %40, %41 : vector<8x8xf32>
    %cst_21 = arith.constant dense<0xFF800000> : vector<8xf32>
    %43 = vector.multi_reduction <maximumf>, %42, %cst_21 [1] : vector<8x8xf32> to vector<8xf32>
    %44 = vector.shape_cast %43 : vector<8xf32> to vector<8x1xf32>
    %45 = vector.broadcast %44 : vector<8x1xf32> to vector<8x8xf32>
    %46 = arith.subf %42, %45 : vector<8x8xf32>
    %47 = math.exp %46 : vector<8x8xf32>
    %cst_22 = arith.constant dense<0.000000e+00> : vector<8xf32>
    %48 = vector.multi_reduction <add>, %47, %cst_22 [1] : vector<8x8xf32> to vector<8xf32>
    %49 = vector.shape_cast %48 : vector<8xf32> to vector<8x1xf32>
    %50 = tpu.reciprocal %49 {approx = true} : vector<8x1xf32> -> vector<8x1xf32>
    %51 = vector.broadcast %50 : vector<8x1xf32> to vector<8x8xf32>
    %52 = arith.mulf %47, %51 : vector<8x8xf32>
    %53 = arith.truncf %52 : vector<8x8xf32> to vector<8x8xbf16>
    %cst_23 = arith.constant dense<0.000000e+00> : vector<8x4xf32>
    %54 = tpu.matmul %53, %39, %cst_23 {dimension_numbers = #tpu.dot_dimension_numbers<[1], [0], [0], [1], [0, 0, 1, 1], [], []>} : vector<8x8xbf16>, vector<8x4xbf16>, vector<8x4xf32> -> vector<8x4xf32>
    %c0_24 = arith.constant 0 : index
    %c0_25 = arith.constant 0 : index
    %55 = vector.load %arg14[%c0_24, %c0_25] : memref<8x32xf32, #tpu.memory_space<vmem>>, vector<8x4xf32>
    tpu.vector_store %arg14[%c0_24, %c0_25], %54 {strides = array<i32>} : memref<8x32xf32, #tpu.memory_space<vmem>>, vector<8x4xf32>,
    %56 = vector.extract_strided_slice %36 {offsets = [0, 4], sizes = [8, 4], strides = [1, 1]} : vector<8x96xbf16> to vector<8x4xbf16>
    %57 = vector.extract_strided_slice %36 {offsets = [0, 36], sizes = [8, 4], strides = [1, 1]} : vector<8x96xbf16> to vector<8x4xbf16>
    %58 = vector.extract_strided_slice %36 {offsets = [0, 68], sizes = [8, 4], strides = [1, 1]} : vector<8x96xbf16> to vector<8x4xbf16>
    %cst_26 = arith.constant dense<0.000000e+00> : vector<8x8xf32>
    %59 = tpu.matmul %56, %57, %cst_26 {dimension_numbers = #tpu.dot_dimension_numbers<[1], [1], [0], [0], [0, 0, 1, 0], [], []>} : vector<8x4xbf16>, vector<8x4xbf16>, vector<8x8xf32> -> vector<8x8xf32>
    %cst_27 = arith.constant 5.000000e-01 : f32
    %60 = vector.broadcast %cst_27 : f32 to vector<8x8xf32>
    %61 = arith.mulf %59, %60 : vector<8x8xf32>
    %cst_28 = arith.constant dense<0xFF800000> : vector<8xf32>
    %62 = vector.multi_reduction <maximumf>, %61, %cst_28 [1] : vector<8x8xf32> to vector<8xf32>
    %63 = vector.shape_cast %62 : vector<8xf32> to vector<8x1xf32>
    %64 = vector.broadcast %63 : vector<8x1xf32> to vector<8x8xf32>
    %65 = arith.subf %61, %64 : vector<8x8xf32>
    %66 = math.exp %65 : vector<8x8xf32>
    %cst_29 = arith.constant dense<0.000000e+00> : vector<8xf32>
    %67 = vector.multi_reduction <add>, %66, %cst_29 [1] : vector<8x8xf32> to vector<8xf32>
    %68 = vector.shape_cast %67 : vector<8xf32> to vector<8x1xf32>
    %69 = tpu.reciprocal %68 {approx = true} : vector<8x1xf32> -> vector<8x1xf32>
    %70 = vector.broadcast %69 : vector<8x1xf32> to vector<8x8xf32>
    %71 = arith.mulf %66, %70 : vector<8x8xf32>
    %72 = arith.truncf %71 : vector<8x8xf32> to vector<8x8xbf16>
    %cst_30 = arith.constant dense<0.000000e+00> : vector<8x4xf32>
    %73 = tpu.matmul %72, %58, %cst_30 {dimension_numbers = #tpu.dot_dimension_numbers<[1], [0], [0], [1], [0, 0, 1, 1], [], []>} : vector<8x8xbf16>, vector<8x4xbf16>, vector<8x4xf32> -> vector<8x4xf32>
    %c0_31 = arith.constant 0 : index
    %c4 = arith.constant 4 : index
    %74 = vector.load %arg14[%c0_31, %c4] : memref<8x32xf32, #tpu.memory_space<vmem>>, vector<8x4xf32>
    tpu.vector_store %arg14[%c0_31, %c4], %73 {strides = array<i32>} : memref<8x32xf32, #tpu.memory_space<vmem>>, vector<8x4xf32>,
    %75 = vector.extract_strided_slice %36 {offsets = [0, 8], sizes = [8, 4], strides = [1, 1]} : vector<8x96xbf16> to vector<8x4xbf16>
    %76 = vector.extract_strided_slice %36 {offsets = [0, 40], sizes = [8, 4], strides = [1, 1]} : vector<8x96xbf16> to vector<8x4xbf16>
    %77 = vector.extract_strided_slice %36 {offsets = [0, 72], sizes = [8, 4], strides = [1, 1]} : vector<8x96xbf16> to vector<8x4xbf16>
    %cst_32 = arith.constant dense<0.000000e+00> : vector<8x8xf32>
    %78 = tpu.matmul %75, %76, %cst_32 {dimension_numbers = #tpu.dot_dimension_numbers<[1], [1], [0], [0], [0, 0, 1, 0], [], []>} : vector<8x4xbf16>, vector<8x4xbf16>, vector<8x8xf32> -> vector<8x8xf32>
    %cst_33 = arith.constant 5.000000e-01 : f32
    %79 = vector.broadcast %cst_33 : f32 to vector<8x8xf32>
    %80 = arith.mulf %78, %79 : vector<8x8xf32>
    %cst_34 = arith.constant dense<0xFF800000> : vector<8xf32>
    %81 = vector.multi_reduction <maximumf>, %80, %cst_34 [1] : vector<8x8xf32> to vector<8xf32>
    %82 = vector.shape_cast %81 : vector<8xf32> to vector<8x1xf32>
    %83 = vector.broadcast %82 : vector<8x1xf32> to vector<8x8xf32>
    %84 = arith.subf %80, %83 : vector<8x8xf32>
    %85 = math.exp %84 : vector<8x8xf32>
    %cst_35 = arith.constant dense<0.000000e+00> : vector<8xf32>
    %86 = vector.multi_reduction <add>, %85, %cst_35 [1] : vector<8x8xf32> to vector<8xf32>
    %87 = vector.shape_cast %86 : vector<8xf32> to vector<8x1xf32>
    %88 = tpu.reciprocal %87 {approx = true} : vector<8x1xf32> -> vector<8x1xf32>
    %89 = vector.broadcast %88 : vector<8x1xf32> to vector<8x8xf32>
    %90 = arith.mulf %85, %89 : vector<8x8xf32>
    %91 = arith.truncf %90 : vector<8x8xf32> to vector<8x8xbf16>
    %cst_36 = arith.constant dense<0.000000e+00> : vector<8x4xf32>
    %92 = tpu.matmul %91, %77, %cst_36 {dimension_numbers = #tpu.dot_dimension_numbers<[1], [0], [0], [1], [0, 0, 1, 1], [], []>} : vector<8x8xbf16>, vector<8x4xbf16>, vector<8x4xf32> -> vector<8x4xf32>
    %c0_37 = arith.constant 0 : index
    %c8 = arith.constant 8 : index
    %93 = vector.load %arg14[%c0_37, %c8] : memref<8x32xf32, #tpu.memory_space<vmem>>, vector<8x4xf32>
    tpu.vector_store %arg14[%c0_37, %c8], %92 {strides = array<i32>} : memref<8x32xf32, #tpu.memory_space<vmem>>, vector<8x4xf32>,
    %94 = vector.extract_strided_slice %36 {offsets = [0, 12], sizes = [8, 4], strides = [1, 1]} : vector<8x96xbf16> to vector<8x4xbf16>
    %95 = vector.extract_strided_slice %36 {offsets = [0, 44], sizes = [8, 4], strides = [1, 1]} : vector<8x96xbf16> to vector<8x4xbf16>
    %96 = vector.extract_strided_slice %36 {offsets = [0, 76], sizes = [8, 4], strides = [1, 1]} : vector<8x96xbf16> to vector<8x4xbf16>
    %cst_38 = arith.constant dense<0.000000e+00> : vector<8x8xf32>
    %97 = tpu.matmul %94, %95, %cst_38 {dimension_numbers = #tpu.dot_dimension_numbers<[1], [1], [0], [0], [0, 0, 1, 0], [], []>} : vector<8x4xbf16>, vector<8x4xbf16>, vector<8x8xf32> -> vector<8x8xf32>
    %cst_39 = arith.constant 5.000000e-01 : f32
    %98 = vector.broadcast %cst_39 : f32 to vector<8x8xf32>
    %99 = arith.mulf %97, %98 : vector<8x8xf32>
    %cst_40 = arith.constant dense<0xFF800000> : vector<8xf32>
    %100 = vector.multi_reduction <maximumf>, %99, %cst_40 [1] : vector<8x8xf32> to vector<8xf32>
    %101 = vector.shape_cast %100 : vector<8xf32> to vector<8x1xf32>
    %102 = vector.broadcast %101 : vector<8x1xf32> to vector<8x8xf32>
    %103 = arith.subf %99, %102 : vector<8x8xf32>
    %104 = math.exp %103 : vector<8x8xf32>
    %cst_41 = arith.constant dense<0.000000e+00> : vector<8xf32>
    %105 = vector.multi_reduction <add>, %104, %cst_41 [1] : vector<8x8xf32> to vector<8xf32>
    %106 = vector.shape_cast %105 : vector<8xf32> to vector<8x1xf32>
    %107 = tpu.reciprocal %106 {approx = true} : vector<8x1xf32> -> vector<8x1xf32>
    %108 = vector.broadcast %107 : vector<8x1xf32> to vector<8x8xf32>
    %109 = arith.mulf %104, %108 : vector<8x8xf32>
    %110 = arith.truncf %109 : vector<8x8xf32> to vector<8x8xbf16>
    %cst_42 = arith.constant dense<0.000000e+00> : vector<8x4xf32>
    %111 = tpu.matmul %110, %96, %cst_42 {dimension_numbers = #tpu.dot_dimension_numbers<[1], [0], [0], [1], [0, 0, 1, 1], [], []>} : vector<8x8xbf16>, vector<8x4xbf16>, vector<8x4xf32> -> vector<8x4xf32>
    %c0_43 = arith.constant 0 : index
    %c12 = arith.constant 12 : index
    %112 = vector.load %arg14[%c0_43, %c12] : memref<8x32xf32, #tpu.memory_space<vmem>>, vector<8x4xf32>
    tpu.vector_store %arg14[%c0_43, %c12], %111 {strides = array<i32>} : memref<8x32xf32, #tpu.memory_space<vmem>>, vector<8x4xf32>,
    %113 = vector.extract_strided_slice %36 {offsets = [0, 16], sizes = [8, 4], strides = [1, 1]} : vector<8x96xbf16> to vector<8x4xbf16>
    %114 = vector.extract_strided_slice %36 {offsets = [0, 48], sizes = [8, 4], strides = [1, 1]} : vector<8x96xbf16> to vector<8x4xbf16>
    %115 = vector.extract_strided_slice %36 {offsets = [0, 80], sizes = [8, 4], strides = [1, 1]} : vector<8x96xbf16> to vector<8x4xbf16>
    %cst_44 = arith.constant dense<0.000000e+00> : vector<8x8xf32>
    %116 = tpu.matmul %113, %114, %cst_44 {dimension_numbers = #tpu.dot_dimension_numbers<[1], [1], [0], [0], [0, 0, 1, 0], [], []>} : vector<8x4xbf16>, vector<8x4xbf16>, vector<8x8xf32> -> vector<8x8xf32>
    %cst_45 = arith.constant 5.000000e-01 : f32
    %117 = vector.broadcast %cst_45 : f32 to vector<8x8xf32>
    %118 = arith.mulf %116, %117 : vector<8x8xf32>
    %cst_46 = arith.constant dense<0xFF800000> : vector<8xf32>
    %119 = vector.multi_reduction <maximumf>, %118, %cst_46 [1] : vector<8x8xf32> to vector<8xf32>
    %120 = vector.shape_cast %119 : vector<8xf32> to vector<8x1xf32>
    %121 = vector.broadcast %120 : vector<8x1xf32> to vector<8x8xf32>
    %122 = arith.subf %118, %121 : vector<8x8xf32>
    %123 = math.exp %122 : vector<8x8xf32>
    %cst_47 = arith.constant dense<0.000000e+00> : vector<8xf32>
    %124 = vector.multi_reduction <add>, %123, %cst_47 [1] : vector<8x8xf32> to vector<8xf32>
    %125 = vector.shape_cast %124 : vector<8xf32> to vector<8x1xf32>
    %126 = tpu.reciprocal %125 {approx = true} : vector<8x1xf32> -> vector<8x1xf32>
    %127 = vector.broadcast %126 : vector<8x1xf32> to vector<8x8xf32>
    %128 = arith.mulf %123, %127 : vector<8x8xf32>
    %129 = arith.truncf %128 : vector<8x8xf32> to vector<8x8xbf16>
    %cst_48 = arith.constant dense<0.000000e+00> : vector<8x4xf32>
    %130 = tpu.matmul %129, %115, %cst_48 {dimension_numbers = #tpu.dot_dimension_numbers<[1], [0], [0], [1], [0, 0, 1, 1], [], []>} : vector<8x8xbf16>, vector<8x4xbf16>, vector<8x4xf32> -> vector<8x4xf32>
    %c0_49 = arith.constant 0 : index
    %c16 = arith.constant 16 : index
    %131 = vector.load %arg14[%c0_49, %c16] : memref<8x32xf32, #tpu.memory_space<vmem>>, vector<8x4xf32>
    tpu.vector_store %arg14[%c0_49, %c16], %130 {strides = array<i32>} : memref<8x32xf32, #tpu.memory_space<vmem>>, vector<8x4xf32>,
    %132 = vector.extract_strided_slice %36 {offsets = [0, 20], sizes = [8, 4], strides = [1, 1]} : vector<8x96xbf16> to vector<8x4xbf16>
    %133 = vector.extract_strided_slice %36 {offsets = [0, 52], sizes = [8, 4], strides = [1, 1]} : vector<8x96xbf16> to vector<8x4xbf16>
    %134 = vector.extract_strided_slice %36 {offsets = [0, 84], sizes = [8, 4], strides = [1, 1]} : vector<8x96xbf16> to vector<8x4xbf16>
    %cst_50 = arith.constant dense<0.000000e+00> : vector<8x8xf32>
    %135 = tpu.matmul %132, %133, %cst_50 {dimension_numbers = #tpu.dot_dimension_numbers<[1], [1], [0], [0], [0, 0, 1, 0], [], []>} : vector<8x4xbf16>, vector<8x4xbf16>, vector<8x8xf32> -> vector<8x8xf32>
    %cst_51 = arith.constant 5.000000e-01 : f32
    %136 = vector.broadcast %cst_51 : f32 to vector<8x8xf32>
    %137 = arith.mulf %135, %136 : vector<8x8xf32>
    %cst_52 = arith.constant dense<0xFF800000> : vector<8xf32>
    %138 = vector.multi_reduction <maximumf>, %137, %cst_52 [1] : vector<8x8xf32> to vector<8xf32>
    %139 = vector.shape_cast %138 : vector<8xf32> to vector<8x1xf32>
    %140 = vector.broadcast %139 : vector<8x1xf32> to vector<8x8xf32>
    %141 = arith.subf %137, %140 : vector<8x8xf32>
    %142 = math.exp %141 : vector<8x8xf32>
    %cst_53 = arith.constant dense<0.000000e+00> : vector<8xf32>
    %143 = vector.multi_reduction <add>, %142, %cst_53 [1] : vector<8x8xf32> to vector<8xf32>
    %144 = vector.shape_cast %143 : vector<8xf32> to vector<8x1xf32>
    %145 = tpu.reciprocal %144 {approx = true} : vector<8x1xf32> -> vector<8x1xf32>
    %146 = vector.broadcast %145 : vector<8x1xf32> to vector<8x8xf32>
    %147 = arith.mulf %142, %146 : vector<8x8xf32>
    %148 = arith.truncf %147 : vector<8x8xf32> to vector<8x8xbf16>
    %cst_54 = arith.constant dense<0.000000e+00> : vector<8x4xf32>
    %149 = tpu.matmul %148, %134, %cst_54 {dimension_numbers = #tpu.dot_dimension_numbers<[1], [0], [0], [1], [0, 0, 1, 1], [], []>} : vector<8x8xbf16>, vector<8x4xbf16>, vector<8x4xf32> -> vector<8x4xf32>
    %c0_55 = arith.constant 0 : index
    %c20 = arith.constant 20 : index
    %150 = vector.load %arg14[%c0_55, %c20] : memref<8x32xf32, #tpu.memory_space<vmem>>, vector<8x4xf32>
    tpu.vector_store %arg14[%c0_55, %c20], %149 {strides = array<i32>} : memref<8x32xf32, #tpu.memory_space<vmem>>, vector<8x4xf32>,
    %151 = vector.extract_strided_slice %36 {offsets = [0, 24], sizes = [8, 4], strides = [1, 1]} : vector<8x96xbf16> to vector<8x4xbf16>
    %152 = vector.extract_strided_slice %36 {offsets = [0, 56], sizes = [8, 4], strides = [1, 1]} : vector<8x96xbf16> to vector<8x4xbf16>
    %153 = vector.extract_strided_slice %36 {offsets = [0, 88], sizes = [8, 4], strides = [1, 1]} : vector<8x96xbf16> to vector<8x4xbf16>
    %cst_56 = arith.constant dense<0.000000e+00> : vector<8x8xf32>
    %154 = tpu.matmul %151, %152, %cst_56 {dimension_numbers = #tpu.dot_dimension_numbers<[1], [1], [0], [0], [0, 0, 1, 0], [], []>} : vector<8x4xbf16>, vector<8x4xbf16>, vector<8x8xf32> -> vector<8x8xf32>
    %cst_57 = arith.constant 5.000000e-01 : f32
    %155 = vector.broadcast %cst_57 : f32 to vector<8x8xf32>
    %156 = arith.mulf %154, %155 : vector<8x8xf32>
    %cst_58 = arith.constant dense<0xFF800000> : vector<8xf32>
    %157 = vector.multi_reduction <maximumf>, %156, %cst_58 [1] : vector<8x8xf32> to vector<8xf32>
    %158 = vector.shape_cast %157 : vector<8xf32> to vector<8x1xf32>
    %159 = vector.broadcast %158 : vector<8x1xf32> to vector<8x8xf32>
    %160 = arith.subf %156, %159 : vector<8x8xf32>
    %161 = math.exp %160 : vector<8x8xf32>
    %cst_59 = arith.constant dense<0.000000e+00> : vector<8xf32>
    %162 = vector.multi_reduction <add>, %161, %cst_59 [1] : vector<8x8xf32> to vector<8xf32>
    %163 = vector.shape_cast %162 : vector<8xf32> to vector<8x1xf32>
    %164 = tpu.reciprocal %163 {approx = true} : vector<8x1xf32> -> vector<8x1xf32>
    %165 = vector.broadcast %164 : vector<8x1xf32> to vector<8x8xf32>
    %166 = arith.mulf %161, %165 : vector<8x8xf32>
    %167 = arith.truncf %166 : vector<8x8xf32> to vector<8x8xbf16>
    %cst_60 = arith.constant dense<0.000000e+00> : vector<8x4xf32>
    %168 = tpu.matmul %167, %153, %cst_60 {dimension_numbers = #tpu.dot_dimension_numbers<[1], [0], [0], [1], [0, 0, 1, 1], [], []>} : vector<8x8xbf16>, vector<8x4xbf16>, vector<8x4xf32> -> vector<8x4xf32>
    %c0_61 = arith.constant 0 : index
    %c24 = arith.constant 24 : index
    %169 = vector.load %arg14[%c0_61, %c24] : memref<8x32xf32, #tpu.memory_space<vmem>>, vector<8x4xf32>
    tpu.vector_store %arg14[%c0_61, %c24], %168 {strides = array<i32>} : memref<8x32xf32, #tpu.memory_space<vmem>>, vector<8x4xf32>,
    %170 = vector.extract_strided_slice %36 {offsets = [0, 28], sizes = [8, 4], strides = [1, 1]} : vector<8x96xbf16> to vector<8x4xbf16>
    %171 = vector.extract_strided_slice %36 {offsets = [0, 60], sizes = [8, 4], strides = [1, 1]} : vector<8x96xbf16> to vector<8x4xbf16>
    %172 = vector.extract_strided_slice %36 {offsets = [0, 92], sizes = [8, 4], strides = [1, 1]} : vector<8x96xbf16> to vector<8x4xbf16>
    %cst_62 = arith.constant dense<0.000000e+00> : vector<8x8xf32>
    %173 = tpu.matmul %170, %171, %cst_62 {dimension_numbers = #tpu.dot_dimension_numbers<[1], [1], [0], [0], [0, 0, 1, 0], [], []>} : vector<8x4xbf16>, vector<8x4xbf16>, vector<8x8xf32> -> vector<8x8xf32>
    %cst_63 = arith.constant 5.000000e-01 : f32
    %174 = vector.broadcast %cst_63 : f32 to vector<8x8xf32>
    %175 = arith.mulf %173, %174 : vector<8x8xf32>
    %cst_64 = arith.constant dense<0xFF800000> : vector<8xf32>
    %176 = vector.multi_reduction <maximumf>, %175, %cst_64 [1] : vector<8x8xf32> to vector<8xf32>
    %177 = vector.shape_cast %176 : vector<8xf32> to vector<8x1xf32>
    %178 = vector.broadcast %177 : vector<8x1xf32> to vector<8x8xf32>
    %179 = arith.subf %175, %178 : vector<8x8xf32>
    %180 = math.exp %179 : vector<8x8xf32>
    %cst_65 = arith.constant dense<0.000000e+00> : vector<8xf32>
    %181 = vector.multi_reduction <add>, %180, %cst_65 [1] : vector<8x8xf32> to vector<8xf32>
    %182 = vector.shape_cast %181 : vector<8xf32> to vector<8x1xf32>
    %183 = tpu.reciprocal %182 {approx = true} : vector<8x1xf32> -> vector<8x1xf32>
    %184 = vector.broadcast %183 : vector<8x1xf32> to vector<8x8xf32>
    %185 = arith.mulf %180, %184 : vector<8x8xf32>
    %186 = arith.truncf %185 : vector<8x8xf32> to vector<8x8xbf16>
    %cst_66 = arith.constant dense<0.000000e+00> : vector<8x4xf32>
    %187 = tpu.matmul %186, %172, %cst_66 {dimension_numbers = #tpu.dot_dimension_numbers<[1], [0], [0], [1], [0, 0, 1, 1], [], []>} : vector<8x8xbf16>, vector<8x4xbf16>, vector<8x4xf32> -> vector<8x4xf32>
    %c0_67 = arith.constant 0 : index
    %c28 = arith.constant 28 : index
    %188 = vector.load %arg14[%c0_67, %c28] : memref<8x32xf32, #tpu.memory_space<vmem>>, vector<8x4xf32>
    tpu.vector_store %arg14[%c0_67, %c28], %187 {strides = array<i32>} : memref<8x32xf32, #tpu.memory_space<vmem>>, vector<8x4xf32>,
    %c0_68 = arith.constant 0 : index
    %c0_69 = arith.constant 0 : index
    %189 = vector.load %arg14[%c0_68, %c0_69] : memref<8x32xf32, #tpu.memory_space<vmem>>, vector<8x32xf32>
    %190 = arith.truncf %189 : vector<8x32xf32> to vector<8x32xbf16>
    %cst_70 = arith.constant dense<0.000000e+00> : vector<8x32xf32>
    %191 = tpu.matmul %190, %1, %cst_70 {dimension_numbers = #tpu.dot_dimension_numbers<[1], [0], [0], [1], [0, 0, 1, 1], [], []>} : vector<8x32xbf16>, vector<32x32xbf16>, vector<8x32xf32> -> vector<8x32xf32>
    %192 = arith.addf %5, %191 : vector<8x32xf32>
    %c0_71 = arith.constant 0 : index
    %c0_72 = arith.constant 0 : index
    %193 = vector.load %arg6[%c0_71, %c0_72] : memref<1x32xf32, #tpu.memory_space<vmem>>, vector<1x32xf32>
    %194 = vector.shape_cast %193 : vector<1x32xf32> to vector<32xf32>
    %195 = vector.shape_cast %194 : vector<32xf32> to vector<1x32xf32>
    %196 = vector.broadcast %195 : vector<1x32xf32> to vector<8x32xf32>
    %197 = arith.addf %192, %196 : vector<8x32xf32>
    %c0_73 = arith.constant 0 : index
    %c0_74 = arith.constant 0 : index
    %198 = vector.load %arg7[%c0_73, %c0_74] : memref<1x32xf32, #tpu.memory_space<vmem>>, vector<1x32xf32>
    %199 = vector.shape_cast %198 : vector<1x32xf32> to vector<32xf32>
    %c0_75 = arith.constant 0 : index
    %c0_76 = arith.constant 0 : index
    %200 = vector.load %arg8[%c0_75, %c0_76] : memref<1x32xf32, #tpu.memory_space<vmem>>, vector<1x32xf32>
    %201 = vector.shape_cast %200 : vector<1x32xf32> to vector<32xf32>
    %cst_77 = arith.constant dense<0.000000e+00> : vector<8xf32>
    %202 = vector.multi_reduction <add>, %197, %cst_77 [1] : vector<8x32xf32> to vector<8xf32>
    %203 = vector.shape_cast %202 : vector<8xf32> to vector<8x1xf32>
    %cst_78 = arith.constant 3.200000e+01 : f32
    %204 = vector.broadcast %cst_78 : f32 to vector<8x1xf32>
    %205 = arith.divf %203, %204 : vector<8x1xf32>
    %206 = vector.broadcast %205 : vector<8x1xf32> to vector<8x32xf32>
    %207 = arith.subf %197, %206 : vector<8x32xf32>
    %208 = arith.mulf %207, %207 : vector<8x32xf32>
    %cst_79 = arith.constant dense<0.000000e+00> : vector<8xf32>
    %209 = vector.multi_reduction <add>, %208, %cst_79 [1] : vector<8x32xf32> to vector<8xf32>
    %210 = vector.shape_cast %209 : vector<8xf32> to vector<8x1xf32>
    %cst_80 = arith.constant 3.200000e+01 : f32
    %211 = vector.broadcast %cst_80 : f32 to vector<8x1xf32>
    %212 = arith.divf %210, %211 : vector<8x1xf32>
    %213 = vector.broadcast %205 : vector<8x1xf32> to vector<8x32xf32>
    %214 = arith.subf %197, %213 : vector<8x32xf32>
    %cst_81 = arith.constant 9.99999974E-6 : f32
    %215 = vector.broadcast %cst_81 : f32 to vector<8x1xf32>
    %216 = arith.addf %212, %215 : vector<8x1xf32>
    %217 = math.rsqrt %216 : vector<8x1xf32>
    %218 = vector.broadcast %217 : vector<8x1xf32> to vector<8x32xf32>
    %219 = arith.mulf %214, %218 : vector<8x32xf32>
    %220 = vector.shape_cast %199 : vector<32xf32> to vector<1x32xf32>
    %221 = vector.broadcast %220 : vector<1x32xf32> to vector<8x32xf32>
    %222 = arith.mulf %219, %221 : vector<8x32xf32>
    %223 = vector.shape_cast %201 : vector<32xf32> to vector<1x32xf32>
    %224 = vector.broadcast %223 : vector<1x32xf32> to vector<8x32xf32>
    %225 = arith.addf %222, %224 : vector<8x32xf32>
    %226 = arith.truncf %225 : vector<8x32xf32> to vector<8x32xbf16>
    %cst_82 = arith.constant dense<0.000000e+00> : vector<8x128xf32>
    %227 = tpu.matmul %226, %2, %cst_82 {dimension_numbers = #tpu.dot_dimension_numbers<[1], [0], [0], [1], [0, 0, 1, 1], [], []>} : vector<8x32xbf16>, vector<32x128xbf16>, vector<8x128xf32> -> vector<8x128xf32>
    %c0_83 = arith.constant 0 : index
    %c0_84 = arith.constant 0 : index
    %228 = vector.load %arg10[%c0_83, %c0_84] : memref<1x128xf32, #tpu.memory_space<vmem>>, vector<1x128xf32>
    %229 = vector.shape_cast %228 : vector<1x128xf32> to vector<128xf32>
    %230 = vector.shape_cast %229 : vector<128xf32> to vector<1x128xf32>
    %231 = vector.broadcast %230 : vector<1x128xf32> to vector<8x128xf32>
    %232 = arith.addf %227, %231 : vector<8x128xf32>
    %cst_85 = arith.constant 5.000000e-01 : f32
    %233 = vector.broadcast %cst_85 : f32 to vector<8x128xf32>
    %234 = arith.mulf %233, %232 : vector<8x128xf32>
    %cst_86 = arith.constant 0.707106769 : f32
    %235 = vector.broadcast %cst_86 : f32 to vector<8x128xf32>
    %236 = arith.mulf %232, %235 : vector<8x128xf32>
    %237 = math.erf %236 : vector<8x128xf32>
    %cst_87 = arith.constant 1.000000e+00 : f32
    %238 = vector.broadcast %cst_87 : f32 to vector<8x128xf32>
    %239 = arith.addf %238, %237 : vector<8x128xf32>
    %240 = arith.mulf %234, %239 : vector<8x128xf32>
    %241 = arith.truncf %240 : vector<8x128xf32> to vector<8x128xbf16>
    %cst_88 = arith.constant dense<0.000000e+00> : vector<8x32xf32>
    %242 = tpu.matmul %241, %3, %cst_88 {dimension_numbers = #tpu.dot_dimension_numbers<[1], [0], [0], [1], [0, 0, 1, 1], [], []>} : vector<8x128xbf16>, vector<128x32xbf16>, vector<8x32xf32> -> vector<8x32xf32>
    %c0_89 = arith.constant 0 : index
    %c0_90 = arith.constant 0 : index
    %243 = vector.load %arg12[%c0_89, %c0_90] : memref<1x32xf32, #tpu.memory_space<vmem>>, vector<1x32xf32>
    %244 = vector.shape_cast %243 : vector<1x32xf32> to vector<32xf32>
    %245 = vector.shape_cast %244 : vector<32xf32> to vector<1x32xf32>
    %246 = vector.broadcast %245 : vector<1x32xf32> to vector<8x32xf32>
    %247 = arith.addf %242, %246 : vector<8x32xf32>
    %248 = arith.addf %197, %247 : vector<8x32xf32>
    %c0_91 = arith.constant 0 : index
    %c0_92 = arith.constant 0 : index
    %c0_93 = arith.constant 0 : index
    %249 = vector.load %arg13[%c0_91, %c0_92, %c0_93] : memref<1x8x32xf32, #tpu.memory_space<vmem>>, vector<1x8x32xf32>
    %250 = vector.shape_cast %249 : vector<1x8x32xf32> to vector<8x32xf32>
    %251 = vector.shape_cast %248 : vector<8x32xf32> to vector<1x8x32xf32>
    tpu.vector_store %arg13[%c0_91, %c0_92, %c0_93], %251 {strides = array<i32>} : memref<1x8x32xf32, #tpu.memory_space<vmem>>, vector<1x8x32xf32>,
    return
  }
  func.func @transform_0(%arg0: i32) -> (i32, i32, i32) {
    %c0_i32 = arith.constant 0 : i32
    %c0_i32_0 = arith.constant 0 : i32
    %c0_i32_1 = arith.constant 0 : i32
    return %arg0, %c0_i32, %c0_i32_0 : i32, i32, i32
  }
  func.func @transform_1(%arg0: i32) -> (i32, i32) {
    %c0_i32 = arith.constant 0 : i32
    %c0_i32_0 = arith.constant 0 : i32
    %c0_i32_1 = arith.constant 0 : i32
    return %c0_i32, %c0_i32_0 : i32, i32
  }
  func.func @transform_2(%arg0: i32) -> (i32, i32) {
    %c0_i32 = arith.constant 0 : i32
    %c0_i32_0 = arith.constant 0 : i32
    %c0_i32_1 = arith.constant 0 : i32
    return %c0_i32, %c0_i32_0 : i32, i32
  }
  func.func @transform_3(%arg0: i32) -> (i32, i32) {
    %c0_i32 = arith.constant 0 : i32
    %c0_i32_0 = arith.constant 0 : i32
    %c0_i32_1 = arith.constant 0 : i32
    return %c0_i32, %c0_i32_0 : i32, i32
  }
  func.func @transform_4(%arg0: i32) -> (i32, i32) {
    %c0_i32 = arith.constant 0 : i32
    %c0_i32_0 = arith.constant 0 : i32
    %c0_i32_1 = arith.constant 0 : i32
    return %c0_i32, %c0_i32_0 : i32, i32
  }
  func.func @transform_5(%arg0: i32) -> (i32, i32) {
    %c0_i32 = arith.constant 0 : i32
    %c0_i32_0 = arith.constant 0 : i32
    %c0_i32_1 = arith.constant 0 : i32
    return %c0_i32, %c0_i32_0 : i32, i32
  }
  func.func @transform_6(%arg0: i32) -> (i32, i32) {
    %c0_i32 = arith.constant 0 : i32
    %c0_i32_0 = arith.constant 0 : i32
    %c0_i32_1 = arith.constant 0 : i32
    return %c0_i32, %c0_i32_0 : i32, i32
  }
  func.func @transform_7(%arg0: i32) -> (i32, i32) {
    %c0_i32 = arith.constant 0 : i32
    %c0_i32_0 = arith.constant 0 : i32
    %c0_i32_1 = arith.constant 0 : i32
    return %c0_i32, %c0_i32_0 : i32, i32
  }
  func.func @transform_8(%arg0: i32) -> (i32, i32) {
    %c0_i32 = arith.constant 0 : i32
    %c0_i32_0 = arith.constant 0 : i32
    %c0_i32_1 = arith.constant 0 : i32
    return %c0_i32, %c0_i32_0 : i32, i32
  }
  func.func @transform_9(%arg0: i32) -> (i32, i32) {
    %c0_i32 = arith.constant 0 : i32
    %c0_i32_0 = arith.constant 0 : i32
    %c0_i32_1 = arith.constant 0 : i32
    return %c0_i32, %c0_i32_0 : i32, i32
  }
  func.func @transform_10(%arg0: i32) -> (i32, i32) {
    %c0_i32 = arith.constant 0 : i32
    %c0_i32_0 = arith.constant 0 : i32
    %c0_i32_1 = arith.constant 0 : i32
    return %c0_i32, %c0_i32_0 : i32, i32
  }
  func.func @transform_11(%arg0: i32) -> (i32, i32) {
    %c0_i32 = arith.constant 0 : i32
    %c0_i32_0 = arith.constant 0 : i32
    %c0_i32_1 = arith.constant 0 : i32
    return %c0_i32, %c0_i32_0 : i32, i32
  }
  func.func @transform_12(%arg0: i32) -> (i32, i32, i32) {
    %c0_i32 = arith.constant 0 : i32
    %c0_i32_0 = arith.constant 0 : i32
    %c0_i32_1 = arith.constant 0 : i32
    return %arg0, %c0_i32, %c0_i32_0 : i32, i32, i32
  }
}

</mosaic_0001>

<bundles_post_ra>
// kernel: tpu_custom_call.1
= control target key start
LH: loop header
LB: loop body
LE: loop exit
PB: predicated region body
PF: predicated region fallthrough
CT: control target
= control target key end

     0   :  { %s1943_s0 = inlined_call_operand.vmem [shape: f32[2,8,32], index: 0, kind: input, shape index: {}]   ;;  %s1944_s1 = inlined_call_operand.vmem [shape: f32[1,32], index: 1, kind: input, shape index: {}]   ;;  %s1945_s2 = inlined_call_operand.vmem [shape: f32[1,32], index: 2, kind: input, shape index: {}]   ;;  %s1946_s3 = inlined_call_operand.vmem [shape: bf16[32,96], index: 3, kind: input, shape index: {}]   ;;  %s1947_s4 = inlined_call_operand.vmem [shape: bf16[32,32], index: 4, kind: input, shape index: {}]   ;;  %s1948_s5 = inlined_call_operand.vmem [shape: f32[1,32], index: 5, kind: input, shape index: {}]   ;;  %s1949_s6 = inlined_call_operand.vmem [shape: f32[1,32], index: 6, kind: input, shape index: {}]   ;;  %s1950_s7 = inlined_call_operand.vmem [shape: f32[1,32], index: 7, kind: input, shape index: {}]   ;;  %s1951_s8 = inlined_call_operand.vmem [shape: bf16[32,128], index: 8, kind: input, shape index: {}]   ;;  %s1952_s9 = inlined_call_operand.vmem [shape: f32[1,128], index: 9, kind: input, shape index: {}]   ;;  %s1953_s10 = inlined_call_operand.vmem [shape: bf16[128,32], index: 10, kind: input, shape index: {}]   ;;  %s1954_s11 = inlined_call_operand.vmem [shape: f32[1,32], index: 11, kind: input, shape index: {}]   ;;  %s1955_s12 = inlined_call_operand.hbm [shape: f32[2,8,32], index: 12, kind: output, shape index: {}]  }
   0x1   :  { %1956 = sst [smem:[#allocation6_spill]] %s1943_s0 }
   0x2   :  { %1957 = sst [smem:[#allocation7_spill]] %s1944_s1 }
   0x3   :  { %1958 = sst [smem:[#allocation8_spill]] %s1945_s2 }
   0x4   :  { %17 = vsyncpa [#allocation4], 0 }
   0x5   :  { %19 = vsyncpa [#allocation4 + $0x1], 0  ;;  %s1677_s21 = smov 0   ;;  %s1679_s22 = smov 0  }
   0x6   :  { %s1681_s23 = smov 0   ;;  %s1683_s24 = smov 0  }
   0x7 LB: > { %s1698_s25 = sadd.s32 4294967295, %s1579_s24   ;;  %s1300_s26 = sadd.s32 4294967294, %s1579_s24   ;;  %s1579_s24 = sphi %s1683_s24, %s1967_s24   ;;  %s1575_s23 = sphi %s1681_s23, %s1966_s23   ;;  %s1571_s22 = sphi %s1679_s22, %s1965_s22   ;;  %s1567_s21 = sphi %s1677_s21, %s1964_s21  }
   0x8   : > { %s1702_s27 = sadd.s32 1, %s1579_s24   ;;  %s289_s28 = sadd.s32 1, %s1575_s23 }
   0x9   : > { %s286_s29 = ssub.s32 %s1579_s24, %s1702_s27  ;;  %p299_p0 = scmp.ne.s32.totalorder %s1575_s23, %s1571_s22 }
   0xa   : > { %p287_p1 = scmp.eq.s32.totalorder %s286_s29, 0  ;;  %p300_p2 = scmp.eq.s32.totalorder %s1698_s25, 1 }
   0xb   : > { %p305_p3 = scmp.ne.s32.totalorder %s1571_s22, %s1567_s21  ;;  %p306_p4 = scmp.eq.s32.totalorder %s1300_s26, 1 }
   0xc   : > { %s1713_s30 = scalar_select %p287_p1, %s1575_s23, %s289_s28  }
   0xd   : > { %p1715_p5 = por %p300_p2, %p299_p0  ;;  %p1719_p6 = por %p306_p4, %p305_p3 }
   0xe   : > { %p1303_p7 = scmp.ge.s32.totalorder %s1579_s24, 1  ;;  %p364_p8 = scmp.lt.s32.totalorder %s1579_s24, 3 }
  0x10   : > { %p365_p9 = pnand %p1303_p7, %p364_p8 }
  0x11   : > { %p405_p10 = scmp.lt.s32.totalorder (!%p365_p9), %s1698_s25, 1  ;;  %s1961_s0 = sld [smem:[#allocation6_spill]] (!%p365_p9) }
  0x12   : > { %368 = sbr.rel (%p365_p9) target bundleno = 2521 (0x9d9), region = 68  ;;  %s1962_s1 = sld [smem:[#allocation7_spill]] (!%p365_p9) }
  0x13   : > { %s1963_s2 = sld [smem:[#allocation8_spill]] (!%p365_p9)  ;;  %s1583_s20 = smov (!%p365_p9), 64  }
  0x14   : > { %s1584_s26 = smov (!%p365_p9), 96   ;;  %s1585_s28 = smov (!%p365_p9), 84  }
  0x15   : > { %s1586_s29 = smov (!%p365_p9), 88   ;;  %s1589_s17 = smov (!%p365_p9), 100  }
  0x16   : > { %s1590_s18 = smov (!%p365_p9), 120  }
  0x17   : > { %s406_s15 = scalar_select %p405_p10, %s1698_s25, 1  ;;  %vm441_vm0 = vcmask 261120   ;;  %v1581_v2 = vmov 32.0   ;;  %v1387_v14 = vld [vmem:[%s1946_s3 + $0x8] sm:$0xff]  ;;  %v1386_v15 = vld [vmem:[%s1946_s3] sm:$0xff]  ;;  %vm553_vm5 = vcmask 1043456  }
  0x18   : > { %1477 = vrcp.f32 %v1581_v2  ;;  %501 = vmatpush.bf16.msra.mxu0 %v1387_v14  ;;  %v1470_v25 = vld [vmem:[%s1962_s1] ss:$0 sm:$0xff]  ;;  %vm514_vm6 = vcmask 31744   ;;  %vm535_vm7 = vcmask 64512   ;;  %vm632_vm8 = vcmask 64544  }
  0x19   : > { %s1305_s16 = sshll.u32 %s406_s15, 3  ;;  %v1471_v28 = vld [vmem:[%s1963_s2] ss:$0 sm:$0xff]  ;;  %s1587_s15 = smov 108   ;;  %vm695_vm9 = vcmask 97344   ;;  %vm758_vm10 = vcmask 130144  }
  0x1a   : > { %s408_s19 = scalar_lea.vmem %s1961_s0, %s1305_s16  ;;  %s1588_s16 = smov 68   ;;  %vm821_vm11 = vcmask 162944   ;;  %vm884_vm12 = vcmask 195744   ;;  %vm947_vm13 = vcmask 228544   ;;  %vm1010_vm14 = vcmask 261344  }
  0x1b   : > { %v1730_v0 = vld [vmem:[%s408_s19] sm:$0xff]  ;;  %s1582_s19 = smov 92  }
  0x1c   : > { %v442_v1 = vsel %vm441_vm0, %v1730_v0, 0.0  ;;  %502 = vmatpush.bf16.msra.mxu0 %v1386_v15 }
  0x1d   : > { %443 = vadd.xlane.f32.xlu0 %v442_v1 }
  0x1e   : > { %v1478_v3 = vpop.eup %1477 }
  0x1f   : > { %v446_v4 = vmul.f32 32.0, %v1478_v3  ;;  %vm450_vm1 = vweird.f32 %v1478_v3 }
  0x21   : > { %v447_v5 = vsub.f32 1.0, %v446_v4 }
  0x23   : > { %v448_v6 = vmul.f32 %v1478_v3, %v447_v5 }
  0x25   : > { %v449_v7 = vadd.f32 %v1478_v3, %v448_v6 }
  0x27   : > { %v1734_v8 = vsel %vm450_vm1, %v1478_v3, %v449_v7 }
  0x90   : > { %v444_v9 = vpop.xlane.xlu0 %443 }
  0x91   : > { %v452_v10 = vmul.f32 %v1734_v8, %v444_v9 }
  0x93   : > { %v453_v11 = vsub.f32 %v1730_v0, %v452_v10 }
  0x95   : > { %v454_v12 = vmul.f32 %v453_v11, %v453_v11 }
  0x97   : > { %v455_v13 = vsel %vm441_vm0, %v454_v12, 0.0 }
  0x98   : > { %456 = vadd.xlane.f32.xlu0 %v455_v13 }
 0x10b   : > { %v457_v16 = vpop.xlane.xlu0 %456 }
 0x10c   : > { %v458_v17 = vmul.f32 %v457_v16, %v1734_v8 }
 0x10e   : > { %v459_v18 = vadd.f32 1e-05, %v458_v17 }
 0x110   : > { %1479 = vrsqrt.f32 %v459_v18  ;;  %vm466_vm3 = vweird.f32 %v459_v18 }
 0x116   : > { %v1480_v19 = vpop.eup %1479 }
 0x117   : > { %v461_v20 = vmul.f32 %v1480_v19, %v459_v18  ;;  %vm467_vm2 = vweird.f32 %v1480_v19 }
 0x118   : > { %vm468_vm4 = vmor %vm466_vm3, %vm467_vm2 }
 0x119   : > { %v462_v21 = vmul.f32 %v1480_v19, %v461_v20 }
 0x11b   : > { %v463_v22 = vmul.f32 0.5, %v462_v21 }
 0x11d   : > { %v464_v23 = vsub.f32 1.5, %v463_v22 }
 0x11f   : > { %v465_v24 = vmul.f32 %v1480_v19, %v464_v23 }
 0x121   : > { %v469_v26 = vsel %vm468_vm4, %v1480_v19, %v465_v24 }
 0x122   : > { %v470_v27 = vmul.f32 %v469_v26, %v453_v11 }
 0x124   : > { %v474_v29 = vmul.f32 %v1470_v25, %v470_v27 }
 0x126   : > { %v478_v30 = vadd.f32 %v1471_v28, %v474_v29 }
 0x128   : > { %v479_v31 = vpack.c.bf16 %v478_v30, %v478_v30 }
 0x12a   : > { %1314 = vmatmul.msk.bf16.vlgmr.msra.gmra.mxu0 %vm441_vm0, %v479_v31 }
 0x1a7   : > { %v504_v32 = vpop.f32.mrf.mxu0 }
 0x1a8   : > { %v508_v33 = vpack.c.bf16 %v504_v32, %v504_v32 }
 0x1aa   : > { %v510_v34 = vunpack.c.l.b16 %v508_v33 }
 0x1ac   : > { %v1753_v35 = vpack.c.b16 %v510_v34, %v510_v34 }
 0x1ae   : > { %573 = vrot.lane.b32.xlu0 %v1753_v35, %s1582_s19  ;;  %548 = vrot.lane.b32.xlu2 %v1753_v35, %s1583_s20  ;;  %s1591_s19 = smov 104   ;;  %s1592_s20 = smov 124  }
 0x1af   : > { %512 = vrot.lane.b32.xlu1 %v1753_v35, %s1584_s26  ;;  %v506_v36 = vpop.f32.mrf.mxu0  ;;  %s1593_s26 = smov 116  }
 0x1b6   : > { %699 = vrot.lane.b32.xlu0 %v1753_v35, %s1585_s28  ;;  %s1594_s28 = smov 76  }
 0x1be   : > { %636 = vrot.lane.b32.xlu0 %v1753_v35, %s1586_s29  ;;  %s1595_s29 = smov 80  }
 0x1c6   : > { %823 = vrot.lane.b32.xlu0 %v1753_v35, %s1587_s15  ;;  %s1596_s15 = smov 112  }
 0x1ce   : > { %951 = vrot.lane.b32.xlu0 %v1753_v35, %s1588_s16  ;;  %s1597_s16 = smov 72  }
 0x1d6   : > { %949 = vrot.lane.b32.xlu0 %v1753_v35, %s1589_s17  ;;  %s1598_s17 = smov 60  }
 0x208   : > { %v549_v37 = vpop.permute.xlu2 %548 }
 0x209   : > { %v555_v38 = vsel %vm553_vm5, %v549_v37, 0 }
 0x20a   : > { %564 = vmatpush.bf16.msra.mxu2 %v555_v38 }
 0x220   : > { %v574_v39 = vpop.permute.xlu0 %573 }
 0x221   : > { %v513_v40 = vpop.permute.xlu1 %512  ;;  %v579_v41 = vsel %vm514_vm6, %v574_v39, 0 }
 0x222   : > { %v519_v42 = vsel %vm514_vm6, %v513_v40, 0  ;;  %588 = vmatpush.bf16.xpose.msrb.mxu2 %v579_v41 }
 0x223   : > { %528 = vmatpush.bf16.xpose.msra.mxu1 %v519_v42 }
 0x228   : > { %v700_v43 = vpop.permute.xlu0 %699 }
 0x229   : > { %v705_v44 = vsel %vm514_vm6, %v700_v43, 0 }
 0x22a   : > { %1315 = vmatmul.msk.bf16.vlgmr.msra.gmra.mxu1 %vm514_vm6, %v508_v33  ;;  %714 = vmatpush.bf16.xpose.msra.mxu3 %v705_v44 }
 0x230   : > { %v637_v45 = vpop.permute.xlu0 %636 }
 0x231   : > { %v642_v46 = vsel %vm514_vm6, %v637_v45, 0 }
 0x232   : > { %651 = vmatpush.bf16.xpose.msrb.mxu0 %v642_v46 }
 0x238   : > { %v824_v62 = vpop.permute.xlu0 %823 }
 0x240   : > { %v952_v2 = vpop.permute.xlu0 %951 }
 0x241   : > { %v957_v7 = vsel %vm514_vm6, %v952_v2, 0 }
 0x248   : > { %v950_v13 = vpop.permute.xlu0 %949 }
 0x2a7   : > { %v530_v47 = vpop.f32.mrf.mxu1 }
 0x2a8   : > { %v534_v48 = vmul.f32 0.5, %v530_v47 }
 0x2aa   : > { %v536_v49 = vsel %vm535_vm7, %v534_v48, -inf }
 0x2ab   : > { %537 = vmax.xlane.f32.xlu1 %v536_v49 }
 0x2af   : > { %v532_v50 = vpop.f32.mrf.mxu1 }
 0x2c4   : > { %634 = vrot.lane.b32.xlu1 %v1753_v35, %s1590_s18  ;;  %s1599_s18 = smov 56  }
 0x2cc   : > { %886 = vrot.lane.b32.xlu1 %v1753_v35, %s1591_s19  ;;  %s1600_s19 = smov 44  }
 0x31e   : > { %v538_v51 = vpop.xlane.xlu1 %537 }
 0x31f   : > { %v539_v52 = vsub.f32 %v534_v48, %v538_v51 }
 0x321   : > { %v540_v53 = vmul.f32 1.442695, %v539_v52 }
 0x323   : > { %1481 = vpow2.f32 %v540_v53 }
 0x329   : > { %v1482_v54 = vpop.eup %1481 }
 0x32a   : > { %v542_v55 = vsel %vm535_vm7, %v1482_v54, 0.0 }
 0x32b   : > { %543 = vadd.xlane.f32.xlu2 %v542_v55 }
 0x336   : > { %v635_v56 = vpop.permute.xlu1 %634 }
 0x337   : > { %1319 = vmatmul.msk.bf16.vlgmr.msrb.gmra.mxu0 %vm514_vm6, %v635_v56 }
 0x33e   : > { %v887_v16 = vpop.permute.xlu1 %886 }
 0x343   : > { %571 = vrot.lane.b32.xlu2 %v1753_v35, %s1592_s20  ;;  %s1601_s20 = smov 48  }
 0x34b   : > { %697 = vrot.lane.b32.xlu2 %v1753_v35, %s1593_s26  ;;  %s1602_s26 = smov 40  }
 0x353   : > { %825 = vrot.lane.b32.xlu2 %v1753_v35, %s1594_s28  ;;  %s1603_s28 = smov 52  }
 0x35b   : > { %762 = vrot.lane.b32.xlu2 %v1753_v35, %s1595_s29  ;;  %s1604_s29 = smov 8  }
 0x363   : > { %760 = vrot.lane.b32.xlu2 %v1753_v35, %s1596_s15  ;;  %s1605_s15 = smov 36  }
 0x36b   : > { %888 = vrot.lane.b32.xlu2 %v1753_v35, %s1597_s16  ;;  %s1606_s16 = smov 4  }
 0x39e   : > { %v544_v57 = vpop.xlane.xlu2 %543 }
 0x39f   : > { %1483 = vrcp.f32 %v544_v57 }
 0x3a5   : > { %v1484_v58 = vpop.eup %1483 }
 0x3a6   : > { %v572_v59 = vpop.permute.xlu2 %571  ;;  %v546_v60 = vmul.f32 %v1484_v58, %v1482_v54 }
 0x3a8   : > { %v547_v61 = vpack.c.bf16 %v546_v60, %v546_v60 }
 0x3aa   : > { %1316 = vmatmul.msk.bf16.vlgmr.msra.gmra.mxu2 %vm535_vm7, %v547_v61 }
 0x3ae   : > { %v698_v63 = vpop.permute.xlu2 %697 }
 0x3af   : > { %1321 = vmatmul.msk.bf16.vlgmr.msra.gmra.mxu3 %vm514_vm6, %v698_v63 }
 0x3b4   : > { %v653_v1 = vpop.f32.mrf.mxu0 }
 0x3b5   : > { %v657_v3 = vmul.f32 0.5, %v653_v1 }
 0x3b6   : > { %v826_v4 = vpop.permute.xlu2 %825 }
 0x3b7   : > { %v831_v5 = vsel %vm514_vm6, %v826_v4, 0  ;;  %v658_v6 = vsel %vm535_vm7, %v657_v3, -inf }
 0x3b8   : > { %840 = vmatpush.bf16.xpose.msrb.mxu3 %v831_v5  ;;  %659 = vmax.xlane.f32.xlu1 %v658_v6 }
 0x3ba   : > { %1317 = vmatmul.msk.bf16.vlgmr.msrb.gmra.mxu2 %vm514_vm6, %v572_v59 }
 0x3bc   : > { %v655_v9 = vpop.f32.mrf.mxu0 }
 0x3be   : > { %v763_v10 = vpop.permute.xlu2 %762 }
 0x3bf   : > { %v768_v11 = vsel %vm514_vm6, %v763_v10, 0  ;;  %1325 = vmatmul.msk.bf16.vlgmr.msrb.gmra.mxu3 %vm514_vm6, %v824_v62 }
 0x3c0   : > { %966 = vmatpush.bf16.xpose.msra.mxu3 %v957_v7  ;;  %777 = vmatpush.bf16.xpose.msra.mxu0 %v768_v11 }
 0x3c6   : > { %v761_v12 = vpop.permute.xlu2 %760 }
 0x3c7   : > { %1323 = vmatmul.msk.bf16.vlgmr.msra.gmra.mxu0 %vm514_vm6, %v761_v12 }
 0x3ce   : > { %v889_v14 = vpop.permute.xlu2 %888 }
 0x3cf   : > { %v894_v15 = vsel %vm514_vm6, %v889_v14, 0  ;;  %1329 = vmatmul.msk.bf16.vlgmr.msra.gmra.mxu3 %vm514_vm6, %v950_v13 }
 0x3d0   : > { %903 = vmatpush.bf16.xpose.msrb.mxu0 %v894_v15 }
 0x3d7   : > { %1327 = vmatmul.msk.bf16.vlgmr.msrb.gmra.mxu0 %vm514_vm6, %v887_v16 }
 0x42b   : > { %v660_v32 = vpop.xlane.xlu1 %659 }
 0x42c   : > { %v661_v34 = vsub.f32 %v657_v3, %v660_v32 }
 0x42d   : > { %v566_v17 = vpop.f32.mrf.mxu2 }
 0x42e   : > { %570 = vst.msk [vmem:[#allocation2] sm:$0xff] %vm514_vm6, %v566_v17  ;;  %v662_v36 = vmul.f32 1.442695, %v661_v34 }
 0x430   : > { %1485 = vpow2.f32 %v662_v36 }
 0x432   : > { %v716_v18 = vpop.f32.mrf.mxu3 }
 0x433   : > { %v720_v19 = vmul.f32 0.5, %v716_v18 }
 0x435   : > { %v568_v20 = vpop.f32.mrf.mxu2  ;;  %v721_v21 = vsel %vm535_vm7, %v720_v19, -inf }
 0x436   : > { %722 = vmax.xlane.f32.xlu2 %v721_v21  ;;  %v1486_v44 = vpop.eup %1485 }
 0x437   : > { %v664_v46 = vsel %vm535_vm7, %v1486_v44, 0.0 }
 0x43a   : > { %v718_v22 = vpop.f32.mrf.mxu3 }
 0x43d   : > { %v590_v23 = vpop.f32.mrf.mxu2 }
 0x43e   : > { %v594_v52 = vmul.f32 0.5, %v590_v23 }
 0x440   : > { %v595_v56 = vsel %vm535_vm7, %v594_v52, -inf }
 0x442   : > { %v842_v24 = vpop.f32.mrf.mxu3 }
 0x443   : > { %v846_v25 = vmul.f32 0.5, %v842_v24 }
 0x444   : > { %v779_v26 = vpop.f32.mrf.mxu0 }
 0x445   : > { %v1794_v27 = vmul.f32 0.5, %v779_v26  ;;  %v592_v28 = vpop.f32.mrf.mxu2  ;;  %v847_v29 = vsel %vm535_vm7, %v846_v25, -inf }
 0x446   : > { %848 = vmax.xlane.f32.xlu0 %v847_v29 }
 0x447   : > { %v784_v30 = vsel %vm535_vm7, %v1794_v27, -inf }
 0x448   : > { %785 = vmax.xlane.f32.xlu2 %v784_v30 }
 0x44a   : > { %v844_v31 = vpop.f32.mrf.mxu3 }
 0x44c   : > { %v781_v33 = vpop.f32.mrf.mxu0 }
 0x452   : > { %v968_v37 = vpop.f32.mrf.mxu3 }
 0x453   : > { %v972_v38 = vmul.f32 0.5, %v968_v37 }
 0x454   : > { %v905_v39 = vpop.f32.mrf.mxu0 }
 0x455   : > { %v909_v40 = vmul.f32 0.5, %v905_v39  ;;  %v973_v41 = vsel %vm535_vm7, %v972_v38, -inf }
 0x456   : > { %974 = vmax.xlane.f32.xlu1 %v973_v41 }
 0x457   : > { %v910_v42 = vsel %vm535_vm7, %v909_v40, -inf }
 0x458   : > { %911 = vmax.xlane.f32.xlu2 %v910_v42 }
 0x45a   : > { %v970_v43 = vpop.f32.mrf.mxu3 }
 0x45c   : > { %v907_v45 = vpop.f32.mrf.mxu0 }
 0x460   : > { %665 = vadd.xlane.f32.xlu2 %v664_v46 }
 0x46f   : > { %607 = vrot.lane.b32.xlu1 %v1753_v35, %s1598_s17  ;;  %s1607_s17 = smov 12  }
 0x478   : > { %670 = vrot.lane.b32.xlu2 %v1753_v35, %s1599_s18  ;;  %s1608_s18 = smov 20  }
 0x480   : > { %859 = vrot.lane.b32.xlu2 %v1753_v35, %s1600_s19  ;;  %s1609_s19 = smov 16  }
 0x488   : > { %796 = vrot.lane.b32.xlu2 %v1753_v35, %s1601_s20  ;;  %s1610_s20 = smov 24  }
 0x4a9   : > { %v723_v47 = vpop.xlane.xlu2 %722 }
 0x4aa   : > { %v724_v48 = vsub.f32 %v720_v19, %v723_v47 }
 0x4ac   : > { %v725_v49 = vmul.f32 1.442695, %v724_v48 }
 0x4ae   : > { %1487 = vpow2.f32 %v725_v49 }
 0x4b4   : > { %v1806_v50 = vpop.eup %1487 }
 0x4b5   : > { %v727_v51 = vsel %vm535_vm7, %v1806_v50, 0.0 }
 0x4b6   : > { %728 = vadd.xlane.f32.xlu0 %v727_v51 }
 0x4b9   : > { %v849_v53 = vpop.xlane.xlu0 %848 }
 0x4ba   : > { %v850_v54 = vsub.f32 %v846_v25, %v849_v53 }
 0x4bb   : > { %v786_v57 = vpop.xlane.xlu2 %785 }
 0x4bc   : > { %v851_v55 = vmul.f32 1.442695, %v850_v54  ;;  %v787_v32 = vsub.f32 %v1794_v27, %v786_v57 }
 0x4be   : > { %1489 = vpow2.f32 %v851_v55  ;;  %596 = vmax.xlane.f32.xlu0 %v595_v56  ;;  %v788_v33 = vmul.f32 1.442695, %v787_v32 }
 0x4c4   : > { %v1811_v58 = vpop.eup %1489 }
 0x4c5   : > { %v853_v59 = vsel %vm535_vm7, %v1811_v58, 0.0 }
 0x4c6   : > { %854 = vadd.xlane.f32.xlu1 %v853_v59 }
 0x4c9   : > { %v975_v60 = vpop.xlane.xlu1 %974 }
 0x4ca   : > { %v976_v61 = vsub.f32 %v972_v38, %v975_v60 }
 0x4cb   : > { %v912_v62 = vpop.xlane.xlu2 %911 }
 0x4cc   : > { %v977_v63 = vmul.f32 1.442695, %v976_v61  ;;  %v913_v1 = vsub.f32 %v909_v40, %v912_v62 }
 0x4ce   : > { %1491 = vpow2.f32 %v977_v63  ;;  %v914_v2 = vmul.f32 1.442695, %v913_v1 }
 0x4d0   : > { %1493 = vpow2.f32 %v914_v2 }
 0x4d3   : > { %v666_v3 = vpop.xlane.xlu2 %665 }
 0x4d4   : > { %v1815_v4 = vpop.eup %1491  ;;  %1495 = vrcp.f32 %v666_v3 }
 0x4d5   : > { %v979_v5 = vsel %vm535_vm7, %v1815_v4, 0.0 }
 0x4d6   : > { %v1819_v6 = vpop.eup %1493  ;;  %980 = vadd.xlane.f32.xlu2 %v979_v5 }
 0x4d7   : > { %v916_v7 = vsel %vm535_vm7, %v1819_v6, 0.0 }
 0x4d8   : > { %917 = vadd.xlane.f32.xlu1 %v916_v7 }
 0x4da   : > { %v1496_v9 = vpop.eup %1495 }
 0x4db   : > { %v668_v10 = vmul.f32 %v1496_v9, %v1486_v44  ;;  %v671_v11 = vpop.permute.xlu2 %670 }
 0x4dc   : > { %v676_v12 = vsel %vm553_vm5, %v671_v11, 0 }
 0x4dd   : > { %685 = vmatpush.bf16.msrb.mxu1 %v676_v12  ;;  %v669_v13 = vpack.c.bf16 %v668_v10, %v668_v10 }
 0x4e0   : > { %1320 = vmatmul.msk.bf16.vlgmr.msrb.gmra.mxu1 %vm535_vm7, %v669_v13 }
 0x4e1   : > { %v608_v14 = vpop.permute.xlu1 %607 }
 0x4e2   : > { %v613_v15 = vsel %vm553_vm5, %v608_v14, 0  ;;  %v1389_v14 = vld [vmem:[%s1947_s4 + $0x8] sm:$0xff] }
 0x4e3   : > { %622 = vmatpush.bf16.msra.mxu2 %v613_v15  ;;  %v860_v16 = vpop.permute.xlu2 %859  ;;  %1035 = vmatpush.bf16.msra.mxu0 %v1389_v14  ;;  %v1388_v15 = vld [vmem:[%s1947_s4] sm:$0xff] }
 0x4e4   : > { %v865_v43 = vsel %vm553_vm5, %v860_v16, 0 }
 0x4e7   : > { %1036 = vmatpush.bf16.msra.mxu0 %v1388_v15 }
 0x4eb   : > { %v797_v17 = vpop.permute.xlu2 %796 }
 0x4ec   : > { %v802_v18 = vsel %vm553_vm5, %v797_v17, 0 }
 0x4ed   : > { %811 = vmatpush.bf16.msra.mxu1 %v802_v18 }
 0x4f1   : > { %922 = vrot.lane.b32.xlu1 %v1753_v35, %s1602_s26  ;;  %s1611_s26 = smov 28  }
 0x529   : > { %v729_v19 = vpop.xlane.xlu0 %728 }
 0x531   : > { %v597_v20 = vpop.xlane.xlu0 %596 }
 0x532   : > { %v598_v21 = vsub.f32 %v594_v52, %v597_v20 }
 0x534   : > { %v599_v22 = vmul.f32 1.442695, %v598_v21 }
 0x536   : > { %1497 = vpow2.f32 %v599_v22  ;;  %v1472_v22 = vld [vmem:[%s1948_s5] ss:$0 sm:$0xff] }
 0x537   : > { %1499 = vpow2.f32 %v788_v33 }
 0x539   : > { %v855_v25 = vpop.xlane.xlu1 %854 }
 0x53c   : > { %v1498_v23 = vpop.eup %1497 }
 0x53d   : > { %v601_v24 = vsel %vm535_vm7, %v1498_v23, 0.0  ;;  %v1500_v34 = vpop.eup %1499 }
 0x53e   : > { %602 = vadd.xlane.f32.xlu0 %v601_v24  ;;  %v790_v36 = vsel %vm535_vm7, %v1500_v34, 0.0 }
 0x549   : > { %v981_v49 = vpop.xlane.xlu2 %980 }
 0x54b   : > { %v918_v26 = vpop.xlane.xlu1 %917 }
 0x552   : > { %733 = vrot.lane.b32.xlu0 %v1753_v35, %s1603_s28 }
 0x55d   : > { %v687_v28 = vpop.f32.mrf.mxu1 }
 0x55e   : > { %692 = vrot.lane.b32.xlu2 %v687_v28, %s1604_s29 }
 0x563   : > { %v923_v29 = vpop.permute.xlu1 %922 }
 0x564   : > { %v928_v30 = vsel %vm553_vm5, %v923_v29, 0 }
 0x565   : > { %v689_v31 = vpop.f32.mrf.mxu1  ;;  %937 = vmatpush.bf16.msrb.mxu1 %v928_v30 }
 0x57c   : > { %791 = vadd.xlane.f32.xlu0 %v790_v36 }
 0x590   : > { %985 = vrot.lane.b32.xlu0 %v1753_v35, %s1605_s15 }
 0x5b1   : > { %v603_v37 = vpop.xlane.xlu0 %602 }
 0x5b2   : > { %1501 = vrcp.f32 %v603_v37 }
 0x5b3   : > { %1503 = vrcp.f32 %v729_v19 }
 0x5b4   : > { %1505 = vrcp.f32 %v855_v25 }
 0x5b8   : > { %v1502_v38 = vpop.eup %1501  ;;  %v693_v12 = vpop.permute.xlu2 %692 }
 0x5b9   : > { %v605_v39 = vmul.f32 %v1502_v38, %v1498_v23  ;;  %v1504_v41 = vpop.eup %1503 }
 0x5ba   : > { %v731_v44 = vmul.f32 %v1504_v41, %v1806_v50  ;;  %v1506_v35 = vpop.eup %1505 }
 0x5bb   : > { %v606_v40 = vpack.c.bf16 %v605_v39, %v605_v39  ;;  %v857_v46 = vmul.f32 %v1506_v35, %v1811_v58 }
 0x5bc   : > { %v732_v45 = vpack.c.bf16 %v731_v44, %v731_v44  ;;  %v1473_v44 = vld [vmem:[%s1949_s6] ss:$0 sm:$0xff] }
 0x5bd   : > { %1318 = vmatmul.msk.bf16.vlgmr.msra.gmra.mxu2 %vm535_vm7, %v606_v40  ;;  %v858_v47 = vpack.c.bf16 %v857_v46, %v857_v46 }
 0x5c4   : > { %v734_v42 = vpop.permute.xlu0 %733 }
 0x5c5   : > { %v739_v27 = vsel %vm553_vm5, %v734_v42, 0 }
 0x5c6   : > { %748 = vmatpush.bf16.msrb.mxu2 %v739_v27 }
 0x5ca   : > { %874 = vmatpush.bf16.msra.mxu2 %v865_v43 }
 0x5cd   : > { %1322 = vmatmul.msk.bf16.vlgmr.msrb.gmra.mxu2 %vm535_vm7, %v732_v45 }
 0x5dd   : > { %1326 = vmatmul.msk.bf16.vlgmr.msra.gmra.mxu2 %vm535_vm7, %v858_v47 }
 0x5ef   : > { %v792_v48 = vpop.xlane.xlu0 %791 }
 0x5f0   : > { %1507 = vrcp.f32 %v792_v48 }
 0x5f1   : > { %1509 = vrcp.f32 %v981_v49  ;;  %v1399_v49 = vld [vmem:[%s1953_s10 + $0x38] sm:$0xff] }
 0x5f2   : > { %1511 = vrcp.f32 %v918_v26  ;;  %1210 = vmatpush.bf16.msrb.mxu3 %v1399_v49 }
 0x5f6   : > { %v1508_v51 = vpop.eup %1507 }
 0x5f7   : > { %v794_v52 = vmul.f32 %v1508_v51, %v1500_v34  ;;  %v1510_v50 = vpop.eup %1509  ;;  %v1390_v34 = vld [vmem:[%s1951_s8] sm:$0xff]  ;;  %v1398_v51 = vld [vmem:[%s1953_s10 + $0x30] sm:$0xff] }
 0x5f8   : > { %v983_v54 = vmul.f32 %v1510_v50, %v1815_v4  ;;  %v1512_v55 = vpop.eup %1511  ;;  %1211 = vmatpush.bf16.msrb.mxu3 %v1398_v51  ;;  %v1397_v50 = vld [vmem:[%s1953_s10 + $0x28] sm:$0xff] }
 0x5f9   : > { %v795_v53 = vpack.c.bf16 %v794_v52, %v794_v52  ;;  %v920_v59 = vmul.f32 %v1512_v55, %v1819_v6  ;;  %v1475_v52 = vld [vmem:[%s1952_s9] ss:$0 sm:$0xff] }
 0x5fa   : > { %v984_v58 = vpack.c.bf16 %v983_v54, %v983_v54 }
 0x5fb   : > { %1324 = vmatmul.msk.bf16.vlgmr.msra.gmra.mxu1 %vm535_vm7, %v795_v53  ;;  %v921_v60 = vpack.c.bf16 %v920_v59, %v920_v59 }
 0x5fc   : > { %1212 = vmatpush.bf16.msrb.mxu3 %v1397_v50 }
 0x602   : > { %v986_v56 = vpop.permute.xlu0 %985 }
 0x603   : > { %v991_v57 = vsel %vm553_vm5, %v986_v56, 0  ;;  %v1396_v56 = vld [vmem:[%s1953_s10 + $0x20] sm:$0xff] }
 0x604   : > { %1000 = vmatpush.bf16.msrb.mxu2 %v991_v57  ;;  %1213 = vmatpush.bf16.msrb.mxu3 %v1396_v56 }
 0x607   : > { %1330 = vmatmul.msk.bf16.vlgmr.msrb.gmra.mxu2 %vm535_vm7, %v984_v58 }
 0x60b   : > { %1328 = vmatmul.msk.bf16.vlgmr.msrb.gmra.mxu1 %vm535_vm7, %v921_v60  ;;  %v1395_v60 = vld [vmem:[%s1953_s10 + $0x18] sm:$0xff] }
 0x60c   : > { %1214 = vmatpush.bf16.msrb.mxu3 %v1395_v60 }
 0x640   : > { %v624_v61 = vpop.f32.mrf.mxu2 }
 0x641   : > { %629 = vrot.lane.b32.xlu0 %v624_v61, %s1606_s16 }
 0x648   : > { %v626_v62 = vpop.f32.mrf.mxu2 }
 0x650   : > { %v750_v63 = vpop.f32.mrf.mxu2 }
 0x651   : > { %755 = vrot.lane.b32.xlu0 %v750_v63, %s1607_s17 }
 0x658   : > { %v752_v1 = vpop.f32.mrf.mxu2 }
 0x660   : > { %v876_v2 = vpop.f32.mrf.mxu2 }
 0x661   : > { %881 = vrot.lane.b32.xlu0 %v876_v2, %s1608_s18  ;;  %v1394_v2 = vld [vmem:[%s1953_s10 + $0x10] sm:$0xff]  ;;  %s402_s18 = sand.u32 1, %s1571_s22  }
 0x662   : > { %1215 = vmatpush.bf16.msrb.mxu3 %v1394_v2 }
 0x668   : > { %v878_v3 = vpop.f32.mrf.mxu2 }
 0x678   : > { %v813_v4 = vpop.f32.mrf.mxu1 }
 0x679   : > { %818 = vrot.lane.b32.xlu1 %v813_v4, %s1609_s19  ;;  %s1304_s19 = sshll.u32 %s402_s18, 3 }
 0x67a   : > { %s404_s17 = scalar_lea.vmem [#allocation3], %s1304_s19  ;;  %s1537_s19 = scalar_lea.hbm %s1955_s12, 16 }
 0x67b   : > { %s1238_s0 = sshll.u32 %s404_s17, 4  ;;  %s1239_s0 = int_to_ptr.vmem [resolvable:$true] %s1238_s0 }
 0x680   : > { %v815_v5 = vpop.f32.mrf.mxu1 }
 0x688   : > { %v939_v6 = vpop.f32.mrf.mxu1 }
 0x689   : > { %944 = vrot.lane.b32.xlu1 %v939_v6, %s1610_s20  ;;  %s1383_s20 = sshll.u32 %s1698_s25, 3  ;;  %s1226_s25 = scalar_lea.sflag [#allocation4], %s402_s18 }
 0x68a   : > { %v1002_v7 = vpop.f32.mrf.mxu2  ;;  %s1236_s16 = scalar_lea.hbm %s1955_s12, %s1383_s20 }
 0x68b   : > { %1007 = vrot.lane.b32.xlu0 %v1002_v7, %s1611_s26  ;;  %v1393_v7 = vld [vmem:[%s1953_s10 + $0x8] sm:$0xff]  ;;  %s1240_s1 = sshll.u32 %s1236_s16, 4  ;;  %s1241_s1 = int_to_ptr.hbm [resolvable:$true] %s1240_s1 }
 0x68c   : > { %1216 = vmatpush.bf16.msrb.mxu3 %v1393_v7  ;;  %s1531_s2 = sshra.s32 %s1241_s1, 4  ;;  %s1532_s2 = int_to_ptr.hbm [resolvable:$true] %s1531_s2 }
 0x68d   : > { %s1533_s26 = scalar_lea.hbm %s1532_s2, 8  ;;  %p1538_p0 = scmp.lt.s32.totalorder %s1532_s2, %s1955_s12 }
 0x68e   : > { %p1534_p11 = scmp.ne.s32.totalorder %s1532_s2, %s1533_s26  ;;  %p1539_p1 = scmp.lt.s32.totalorder %s1537_s19, %s1533_s26 }
 0x690   : > { %v941_v9 = vpop.f32.mrf.mxu1  ;;  %p1535_p12 = pnand %p1534_p11, %p1715_p5  ;;  %p1540_p2 = por %p1539_p1, %p1538_p0 }
 0x692   : > { %v1004_v10 = vpop.f32.mrf.mxu2  ;;  %p1536_p13 = pneg %p1535_p12 }
 0x694   : > { %p1541_p3 = pnand %p1540_p2, %p1536_p13 }
 0x6b3   : > { %v630_v11 = vpop.permute.xlu0 %629 }
 0x6b4   : > { %633 = vst.msk [vmem:[#allocation2] sm:$0xff] %vm632_vm8, %v630_v11 }
 0x6b5   : > { %696 = vst.msk [vmem:[#allocation2] sm:$0xff] %vm695_vm9, %v693_v12  ;;  %v1392_v12 = vld [vmem:[%s1953_s10] sm:$0xff] }
 0x6b6   : > { %1217 = vmatpush.bf16.msrb.mxu3 %v1392_v12 }
 0x6c3   : > { %v756_v13 = vpop.permute.xlu0 %755 }
 0x6c4   : > { %759 = vst.msk [vmem:[#allocation2] sm:$0xff] %vm758_vm10, %v756_v13 }
 0x6d3   : > { %v882_v17 = vpop.permute.xlu0 %881 }
 0x6eb   : > { %v819_v16 = vpop.permute.xlu1 %818 }
 0x6ec   : > { %822 = vst.msk [vmem:[#allocation2] sm:$0xff] %vm821_vm11, %v819_v16 }
 0x6ed   : > { %885 = vst.msk [vmem:[#allocation2] sm:$0xff] %vm884_vm12, %v882_v17 }
 0x6fb   : > { %v945_v18 = vpop.permute.xlu1 %944 }
 0x6fc   : > { %948 = vst.msk [vmem:[#allocation2] sm:$0xff] %vm947_vm13, %v945_v18 }
 0x6fd   : > { %v1008_v19 = vpop.permute.xlu0 %1007 }
 0x6fe   : > { %1011 = vst.msk [vmem:[#allocation2] sm:$0xff] %vm1010_vm14, %v1008_v19 }
 0x705   : > { %v1012_v20 = vld [vmem:[#allocation2] sm:$0xff] }
 0x706   : > { %v1013_v21 = vpack.c.bf16 %v1012_v20, %v1012_v20 }
 0x708   : > { %1339 = vmatmul.msk.bf16.vlgmr.msra.gmra.mxu0 %vm441_vm0, %v1013_v21 }
 0x785   : > { %v1038_v23 = vpop.f32.mrf.mxu0 }
 0x786   : > { %v1042_v24 = vadd.f32 %v1038_v23, %v1730_v0  ;;  %v1391_v0 = vld [vmem:[%s1951_s8 + $0x8] sm:$0xff] }
 0x787   : > { %1106 = vmatpush.bf16.msra.mxu1 %v1391_v0 }
 0x788   : > { %v1858_v25 = vadd.f32 %v1472_v22, %v1042_v24 }
 0x78a   : > { %v1050_v26 = vsel %vm441_vm0, %v1858_v25, 0.0 }
 0x78b   : > { %1051 = vadd.xlane.f32.xlu1 %v1050_v26  ;;  %1107 = vmatpush.bf16.msra.mxu1 %v1390_v34 }
 0x78d   : > { %v1040_v28 = vpop.f32.mrf.mxu0 }
 0x7fe   : > { %v1052_v29 = vpop.xlane.xlu1 %1051 }
 0x7ff   : > { %v1053_v30 = vmul.f32 %v1052_v29, %v1734_v8 }
 0x801   : > { %v1054_v31 = vsub.f32 %v1858_v25, %v1053_v30 }
 0x803   : > { %v1055_v32 = vmul.f32 %v1054_v31, %v1054_v31 }
 0x805   : > { %v1056_v33 = vsel %vm441_vm0, %v1055_v32, 0.0 }
 0x806   : > { %1057 = vadd.xlane.f32.xlu2 %v1056_v33 }
 0x879   : > { %v1058_v36 = vpop.xlane.xlu2 %1057 }
 0x87a   : > { %v1059_v37 = vmul.f32 %v1058_v36, %v1734_v8  ;;  %v1474_v8 = vld [vmem:[%s1950_s7] ss:$0 sm:$0xff] }
 0x87c   : > { %v1060_v38 = vadd.f32 1e-05, %v1059_v37 }
 0x87e   : > { %1513 = vrsqrt.f32 %v1060_v38  ;;  %vm1067_vm1 = vweird.f32 %v1060_v38 }
 0x884   : > { %v1514_v39 = vpop.eup %1513 }
 0x885   : > { %v1062_v40 = vmul.f32 %v1514_v39, %v1060_v38  ;;  %vm1068_vm15 = vweird.f32 %v1514_v39 }
 0x886   : > { %vm1069_vm2 = vmor %vm1067_vm1, %vm1068_vm15 }
 0x887   : > { %v1063_v41 = vmul.f32 %v1514_v39, %v1062_v40 }
 0x889   : > { %v1064_v42 = vmul.f32 0.5, %v1063_v41  ;;  %v1476_v41 = vld [vmem:[%s1954_s11] ss:$0 sm:$0xff] }
 0x88b   : > { %v1065_v27 = vsub.f32 1.5, %v1064_v42 }
 0x88d   : > { %v1066_v43 = vmul.f32 %v1514_v39, %v1065_v27 }
 0x88f   : > { %v1070_v45 = vsel %vm1069_vm2, %v1514_v39, %v1066_v43 }
 0x890   : > { %v1071_v35 = vmul.f32 %v1070_v45, %v1054_v31 }
 0x892   : > { %v1075_v46 = vmul.f32 %v1473_v44, %v1071_v35 }
 0x894   : > { %v1079_v47 = vadd.f32 %v1474_v8, %v1075_v46 }
 0x896   : > { %v1080_v48 = vpack.c.bf16 %v1079_v47, %v1079_v47 }
 0x898   : > { %1348 = vmatmul.msk.bf16.vlgmr.msra.gmra.mxu1 %vm441_vm0, %v1080_v48 }
 0x915   : > { %v1109_v53 = vpop.f32.mrf.mxu1 }
 0x916   : > { %v1110_v54 = vadd.f32 %v1475_v52, %v1109_v53 }
 0x918   : > { %v1114_v55 = vmul.f32 0.70710677, %v1110_v54  ;;  %v1113_v37 = vmul.f32 0.5, %v1110_v54 }
 0x91a   : > { %v1115_v57 = vmul.f32 %v1114_v55, %v1114_v55 }
 0x91c   : > { %v1116_v58 = vmin.f32 %v1115_v57, 16.0 }
 0x91d   : > { %v1111_v59 = vpop.f32.mrf.mxu1 }
 0x91e   : > { %v1117_v61 = vmul.f32 2.1237322e-06, %v1116_v58  ;;  %v1128_v62 = vmul.f32 3.8918573e-05, %v1116_v58 }
 0x920   : > { %v1118_v63 = vadd.f32 0.00028619796, %v1117_v61  ;;  %v1129_v1 = vadd.f32 0.001143296, %v1128_v62 }
 0x922   : > { %v1119_v3 = vmul.f32 %v1118_v63, %v1116_v58  ;;  %v1130_v4 = vmul.f32 %v1129_v1, %v1116_v58 }
 0x924   : > { %v1131_v5 = vadd.f32 0.014752088, %v1130_v4  ;;  %v1120_v6 = vadd.f32 0.0036580483, %v1119_v3 }
 0x926   : > { %v1132_v9 = vmul.f32 %v1131_v5, %v1116_v58  ;;  %v1121_v11 = vmul.f32 %v1120_v6, %v1116_v58 }
 0x928   : > { %v1133_v10 = vadd.f32 0.112945676, %v1132_v9  ;;  %v1122_v15 = vadd.f32 0.05243302, %v1121_v11 }
 0x92a   : > { %v1134_v13 = vmul.f32 %v1133_v10, %v1116_v58  ;;  %v1123_v18 = vmul.f32 %v1122_v15, %v1116_v58 }
 0x92c   : > { %v1135_v14 = vadd.f32 0.4994258, %v1134_v13  ;;  %v1124_v19 = vadd.f32 0.18741608, %v1123_v18 }
 0x92e   : > { %v1136_v16 = vmul.f32 %v1135_v14, %v1116_v58  ;;  %v1125_v21 = vmul.f32 %v1124_v19, %v1116_v58 }
 0x930   : > { %v1137_v17 = vadd.f32 1.0, %v1136_v16  ;;  %v1126_v26 = vadd.f32 1.1283791, %v1125_v21 }
 0x932   : > { %1515 = vrcp.f32 %v1137_v17  ;;  %v1149_v24 = vand.u32 2147483648, %v1137_v17  ;;  %v1147_v29 = vand.u32 2147483647, %v1137_v17  ;;  %vm1143_vm4 = vweird.f32 %v1137_v17 }
 0x933   : > { %v1127_v32 = vmul.f32 %v1126_v26, %v1114_v55 }
 0x934   : > { %v1150_v31 = vor.u32 1.1754944e-38, %v1149_v24  ;;  %vm1148_vm6 = vcmp.eq.f32.partialorder %v1147_v29, 8.507059e+37 }
 0x938   : > { %v1516_v20 = vpop.eup %1515 }
 0x939   : > { %v1139_v22 = vmul.f32 %v1516_v20, %v1137_v17  ;;  %vm1144_vm3 = vweird.f32 %v1516_v20 }
 0x93a   : > { %vm1145_vm5 = vmor %vm1143_vm4, %vm1144_vm3 }
 0x93b   : > { %v1140_v23 = vsub.f32 1.0, %v1139_v22 }
 0x93d   : > { %v1141_v28 = vmul.f32 %v1516_v20, %v1140_v23 }
 0x93f   : > { %v1142_v30 = vadd.f32 %v1516_v20, %v1141_v28 }
 0x941   : > { %v1146_v33 = vsel %vm1145_vm5, %v1516_v20, %v1142_v30 }
 0x942   : > { %v1151_v0 = vsel %vm1148_vm6, %v1150_v31, %v1146_v33 }
 0x943   : > { %v1152_v34 = vmul.f32 %v1151_v0, %v1127_v32 }
 0x945   : > { %v1349_v36 = vclamps-f32 %v1152_v34, 1.0 }
 0x947   : > { %v1155_v38 = vadd.f32 1.0, %v1349_v36 }
 0x949   : > { %v1156_v39 = vmul.f32 %v1155_v38, %v1113_v37 }
 0x94b   : > { %v1157_v40 = vpack.c.bf16 %v1156_v39, %v1156_v39 }
 0x94d   : > { %1218 = vmatmul.bf16.vlgmr.msrb.gmra.mxu3 %v1157_v40 }
 0x9d0   : > { %v1219_v42 = vpop.f32.mrf.mxu3 }
 0x9d1   : > { %v1220_v27 = vadd.f32 %v1476_v41, %v1219_v42 }
 0x9d3   : > { %v1223_v43 = vadd.f32 %v1220_v27, %v1858_v25 }
 0x9d5   : > { %1224 = vst.msk [vmem:[%s404_s17] sm:$0xff] %vm441_vm0, %v1223_v43 }
 0x9d6   : > { %1544 = shalt.err (!%p1541_p3)
}
 0x9d7   : > { %1400 = dma.vmem_to_hbm [thread:$0]  (%p1715_p5), %s1239_s0, 128, %s1241_s1, %s1226_s25  }
 0x9d8   : > { %v1221_v25 = vpop.f32.mrf.mxu3 }
 0x9d9 PF: > { %p1406_p4 = scmp.ge.s32.totalorder %s1579_s24, 2  ;;  %s1252_s18 = sand.u32 1, %s1567_s21  }
 0x9da   : > { %s1253_s16 = scalar_lea.sflag [#allocation4], %s1252_s18 }
 0x9db   : > { %p1403_p7 = pnand %p1406_p4, %p1719_p6 }
 0x9dd   : > { %p1404_p8 = pneg %p1403_p7 }
 0x9df   : > { %1562 = dma.done.wait (%p1404_p8), %s1253_s16, 128  }
 0x9e0   : > { %1564 = vsyncadd (%p1404_p8), %s1253_s16, 4294967168  ;;  %p22_p9 = scmp.ge.s32.totalorder %s1702_s27, 4   ;;  %s1964_s21 = smov %s1571_s22 }
 0x9e1   : > { %s1965_s22 = smov %s1575_s23  ;;  %s1966_s23 = smov %s1713_s30 }
 0x9e2   : > { %s1967_s24 = smov %s1702_s27  ;;  %24 = sbr.rel (!%p22_p9) target bundleno = 7 (0x7), region = 103 }
 0x9e7   :  { %1259 = vsyncpa [#allocation4], 1 }
 0x9e8   :  { %1261 = vsyncpa [#allocation4 + $0x1], 1 }

</bundles_post_ra>
